<compile_context>
chip_gen: v7x
topology: tpu7x:2x2x1
jax: 0.10.0
libtpu: 0.0.40
codegen_flags: <defaults>
</compile_context>

<pallas_src>
import functools

import jax
import jax.numpy as jnp
from jax.experimental import pallas as pl
from jax.experimental.pallas import tpu as pltpu


def _round_up(x, m):
    return (x + m - 1) // m * m


# ----------------------------------------------------------------------------
# Kernel 1: direct 3x3 convolution (stride 1, pad 1), NHWC, fused bias + lrelu
# ----------------------------------------------------------------------------
def _conv_kernel(x_ref, w_ref, b_ref, o_ref, *, rows, width, act, neg_slope):
    r = pl.program_id(1)
    base = r * rows * width
    acc = None
    for ky in range(3):
        start = pl.multiple_of(base + ky * width, 8)
        patch = x_ref[0, pl.ds(start, rows * width), :]          # (rows*W, 3*Cin) bf16
        d = jnp.dot(patch, w_ref[ky], preferred_element_type=jnp.float32)
        acc = d if acc is None else acc + d
    res = acc + b_ref[...]
    if act:
        res = jnp.where(res >= 0, res, res * neg_slope)
    o_ref[0] = res.astype(o_ref.dtype)


def _pick_rows(H, W, Cout):
    """Row-tile so the f32 accumulator stays ~<=1MiB and M ~<=2048 rows."""
    budget_rows = max(1, (1 << 20) // (W * Cout * 4))
    lim = min(H, max(1, 2048 // W), budget_rows)
    rows = 1
    for d in range(1, H + 1):
        if H % d == 0 and d <= lim:
            rows = d
    if (rows * W) % 8 != 0:
        rows = H
    return rows


@functools.lru_cache(maxsize=None)
def _get_conv_fn(NB, H, W, Cin3, Cout, rows, act):
    kernel = functools.partial(_conv_kernel, rows=rows, width=W,
                               act=act, neg_slope=0.1)
    n_rt = H // rows
    return pl.pallas_call(
        kernel,
        out_shape=jax.ShapeDtypeStruct((NB, H * W, Cout), jnp.float32),
        grid_spec=pltpu.PrefetchScalarGridSpec(
            num_scalar_prefetch=0,
            grid=(NB, n_rt),
            in_specs=[
                pl.BlockSpec((1, (H + 2) * W, Cin3), lambda b, r: (b, 0, 0)),
                pl.BlockSpec((3, Cin3, Cout), lambda b, r: (0, 0, 0)),
                pl.BlockSpec((1, Cout), lambda b, r: (0, 0)),
            ],
            out_specs=pl.BlockSpec((1, rows * W, Cout), lambda b, r: (b, r, 0)),
        ),
        compiler_params=pltpu.CompilerParams(
            dimension_semantics=("parallel", "parallel"),
            vmem_limit_bytes=32 * 1024 * 1024),
    )


def prep_conv(w, b):
    """Pre-pack PyTorch (Cout, Cin, 3, 3) weights once into (3, 3*Cin, Cout) bf16."""
    Cout, Cin = w.shape[0], w.shape[1]
    w3 = jnp.transpose(w, (2, 3, 1, 0)).reshape(3, 3 * Cin, Cout).astype(jnp.bfloat16)
    return {'w3': w3, 'b2': b.reshape(1, Cout).astype(jnp.float32)}


@functools.partial(jax.jit, static_argnames=('act',))
def conv3x3(x, p, act=False):
    """3x3 stride-1 pad-1 conv (PyTorch semantics), NHWC input (NB, H, W, Cin)."""
    NB, H, W, Cin = x.shape
    Cout = p['w3'].shape[-1]
    xp = jnp.pad(x, ((0, 0), (0, 0), (1, 1), (0, 0)))
    # kx-unroll into the lane dim (3x, bf16); ky taps handled in-kernel.
    xw = jnp.concatenate([xp[:, :, 0:W, :], xp[:, :, 1:W + 1, :], xp[:, :, 2:W + 2, :]],
                         axis=-1)
    xw = jnp.pad(xw, ((0, 0), (1, 1), (0, 0), (0, 0)))
    xw = xw.reshape(NB, (H + 2) * W, 3 * Cin).astype(jnp.bfloat16)
    rows = _pick_rows(H, W, Cout)
    out = _get_conv_fn(NB, H, W, 3 * Cin, Cout, rows, bool(act))(xw, p['w3'], p['b2'])
    return out.reshape(NB, H, W, Cout)


# ----------------------------------------------------------------------------
# Kernel 2: patch-aligned flow warp (8x8 blocks, nearest, zeros padding)
# ----------------------------------------------------------------------------
def _warp_kernel(sy_ref, sx_ref, x_hbm, o_ref, buf, sem, *, nby, nbx):
    b = pl.program_id(0)
    copies = []
    for by in range(nby):
        for bx in range(nbx):
            k = by * nbx + bx
            ys = sy_ref[b, by, bx]
            xs = sx_ref[b, by, bx]
            cp = pltpu.make_async_copy(
                x_hbm.at[b, pl.ds(ys, 8), pl.ds(xs, 8), :],
                buf.at[k], sem.at[k])
            cp.start()
            copies.append(cp)
    for by in range(nby):
        for bx in range(nbx):
            k = by * nbx + bx
            copies[k].wait()
            o_ref[0, by * 8:(by + 1) * 8, bx * 8:(bx + 1) * 8, :] = buf[k]


@functools.lru_cache(maxsize=None)
def _get_warp_fn(n, h, w, C, nby, nbx):
    kernel = functools.partial(_warp_kernel, nby=nby, nbx=nbx)
    return pl.pallas_call(
        kernel,
        out_shape=jax.ShapeDtypeStruct((n, h, w, C), jnp.float32),
        grid_spec=pltpu.PrefetchScalarGridSpec(
            num_scalar_prefetch=2,
            grid=(n,),
            in_specs=[pl.BlockSpec(memory_space=pl.ANY)],
            out_specs=pl.BlockSpec((1, h, w, C), lambda b, sy, sx: (b, 0, 0, 0)),
            scratch_shapes=[pltpu.VMEM((nby * nbx, 8, 8, C), jnp.float32),
                            pltpu.SemaphoreType.DMA((nby * nbx,))],
        ),
        compiler_params=pltpu.CompilerParams(dimension_semantics=("arbitrary",)),
    )


@jax.jit
def flow_warp_avg_patch(x, flow):
    """Patch alignment: 8x8 block-averaged flow + nearest grid_sample (zeros, align_corners)."""
    n, h, w, C = x.shape
    # TODO(synk): reflect-pad path for h/w not multiples of 8 is not implemented here.
    assert h % 8 == 0 and w % 8 == 0
    nby, nbx = h // 8, w // 8
    fpool = flow.reshape(n, nby, 8, nbx, 8, 2).mean(axis=(2, 4))        # (n, nby, nbx, 2)
    dx = jnp.round(fpool[..., 0]).astype(jnp.int32)
    dy = jnp.round(fpool[..., 1]).astype(jnp.int32)
    by0 = (jnp.arange(nby, dtype=jnp.int32) * 8)[None, :, None]
    bx0 = (jnp.arange(nbx, dtype=jnp.int32) * 8)[None, None, :]
    # clamp into the 8-wide zero halo so fully/partially-OOB windows read zeros
    sy = jnp.clip(by0 + dy, -8, h) + 8
    sx = jnp.clip(bx0 + dx, -8, w) + 8
    x_pad = jnp.pad(x, ((0, 0), (8, 8), (8, 8), (0, 0)))
    return _get_warp_fn(n, h, w, C, nby, nbx)(sy, sx, x_pad)


# ----------------------------------------------------------------------------
# Kernel 3: channel sum-of-squares (packed 128 lanes wide)
# ----------------------------------------------------------------------------
def _ssq_kernel(x_ref, s_ref, o_ref):
    x = x_ref[...]
    o_ref[0] = jnp.dot(x * x, s_ref[...], preferred_element_type=jnp.float32)


@functools.lru_cache(maxsize=None)
def _get_ssq_fn(nb, tr, g):
    return pl.pallas_call(
        _ssq_kernel,
        out_shape=jax.ShapeDtypeStruct((nb, tr, g), jnp.float32),
        grid_spec=pltpu.PrefetchScalarGridSpec(
            num_scalar_prefetch=0,
            grid=(nb,),
            in_specs=[pl.BlockSpec((tr, 128), lambda i: (i, 0)),
                      pl.BlockSpec((128, g), lambda i: (0, 0))],
            out_specs=pl.BlockSpec((1, tr, g), lambda i: (i, 0, 0)),
        ),
        compiler_params=pltpu.CompilerParams(dimension_semantics=("parallel",)),
    )


@jax.jit
def channel_sq_sum(x_rc):
    """(R, C) -> (R,) sum of squares over channels (Pallas, C packed into 128 lanes)."""
    R, C = x_rc.shape
    if 128 % C == 0 and R % (128 // C) == 0:
        g = 128 // C
        packed = x_rc.reshape(R // g, 128)
    else:
        g = 1
        packed = jnp.zeros((R, 128), x_rc.dtype).at[:, :C].set(x_rc)
    rows = packed.shape[0]
    tr = 256
    nb = _round_up(rows, tr) // tr
    if nb * tr != rows:
        packed = jnp.pad(packed, ((0, nb * tr - rows), (0, 0)))
    sel = (jnp.arange(128)[:, None] // C == jnp.arange(g)[None, :]).astype(jnp.float32)
    out = _get_ssq_fn(nb, tr, g)(packed.astype(jnp.float32), sel)
    return out.reshape(nb * tr * g)[:R]


# ----------------------------------------------------------------------------
# Kernel 4: small generic matmul (used by the x4 bilinear upsample)
# ----------------------------------------------------------------------------
def _mm_kernel(a_ref, b_ref, o_ref):
    o_ref[...] = jnp.dot(a_ref[...], b_ref[...], preferred_element_type=jnp.float32)


@functools.lru_cache(maxsize=None)
def _get_mm_fn(Mp, K, N, tm):
    return pl.pallas_call(
        _mm_kernel,
        out_shape=jax.ShapeDtypeStruct((Mp, N), jnp.float32),
        grid_spec=pltpu.PrefetchScalarGridSpec(
            num_scalar_prefetch=0,
            grid=(Mp // tm,),
            in_specs=[pl.BlockSpec((tm, K), lambda i: (i, 0)),
                      pl.BlockSpec((K, N), lambda i: (0, 0))],
            out_specs=pl.BlockSpec((tm, N), lambda i: (i, 0)),
        ),
        compiler_params=pltpu.CompilerParams(dimension_semantics=("parallel",)),
    )


def pallas_matmul(a, b, tm=256):
    M, K = a.shape
    _, N = b.shape
    Mp = _round_up(M, tm)
    if Mp != M:
        a = jnp.pad(a, ((0, Mp - M), (0, 0)))
    return _get_mm_fn(Mp, K, N, tm)(a, b)[:M]


# ----------------------------------------------------------------------------
# Glue built on the kernels
# ----------------------------------------------------------------------------
def _upsample_matrix(n_in, scale):
    """Row-interpolation matrix for bilinear upsample, align_corners=False."""
    n_out = n_in * scale
    dst = jnp.arange(n_out, dtype=jnp.float32)
    src = jnp.maximum((dst + 0.5) / scale - 0.5, 0.0)
    i0 = jnp.floor(src)
    i1 = jnp.minimum(i0 + 1, n_in - 1)
    l1 = src - i0
    l0 = 1.0 - l1
    return (jax.nn.one_hot(i0.astype(jnp.int32), n_in, dtype=jnp.float32) * l0[:, None]
            + jax.nn.one_hot(i1.astype(jnp.int32), n_in, dtype=jnp.float32) * l1[:, None])


@jax.jit
def bilinear_upsample_x4(x):
    """NHWC (NB, H, W, C) -> (NB, 4H, 4W, C), bilinear align_corners=False (2 Pallas matmuls)."""
    NB, H, W, C = x.shape
    Ah = _upsample_matrix(H, 4)
    Aw = _upsample_matrix(W, 4)
    t = x.transpose(0, 2, 3, 1).reshape(NB * W * C, H)
    t = pallas_matmul(t, Ah.T)                                            # along H
    t = t.reshape(NB, W, C, 4 * H).transpose(0, 3, 2, 1).reshape(NB * 4 * H * C, W)
    t = pallas_matmul(t, Aw.T)                                            # along W
    return t.reshape(NB, 4 * H, C, 4 * W).transpose(0, 1, 3, 2)


@jax.jit
def flow_warp_bilinear(x, flow):
    """Standard bilinear flow warp (zeros padding, align_corners=True) for the 2-ch flow field."""
    # TODO(synk): per-pixel bilinear gather kept as XLA glue (2 channels only);
    # a general Pallas sublane gather kernel is future work.
    n, h, w, c = x.shape
    gy, gx = jnp.meshgrid(jnp.arange(h, dtype=jnp.float32),
                          jnp.arange(w, dtype=jnp.float32), indexing='ij')
    sx = gx[None] + flow[..., 0]
    sy = gy[None] + flow[..., 1]
    x0 = jnp.floor(sx)
    y0 = jnp.floor(sy)
    lx = sx - x0
    ly = sy - y0
    xf = x.reshape(n, h * w, c)
    bidx = jnp.arange(n)[:, None, None]
    out = jnp.zeros((n, h, w, c), jnp.float32)
    for ddx, ddy, wt in ((0, 0, (1 - lx) * (1 - ly)), (1, 0, lx * (1 - ly)),
                         (0, 1, (1 - lx) * ly), (1, 1, lx * ly)):
        xi = x0 + ddx
        yi = y0 + ddy
        valid = ((xi >= 0) & (xi <= w - 1) & (yi >= 0) & (yi <= h - 1)).astype(jnp.float32)
        idx = (jnp.clip(yi, 0, h - 1) * w + jnp.clip(xi, 0, w - 1)).astype(jnp.int32)
        out = out + xf[bidx, idx] * (wt * valid)[..., None]
    return out


def pixel_shuffle_nhwc(x, r):
    NB, H, W, C = x.shape
    co = C // (r * r)
    x = x.reshape(NB, H, W, co, r, r)
    x = x.transpose(0, 1, 4, 2, 5, 3)
    return x.reshape(NB, H * r, W * r, co)


# ----------------------------------------------------------------------------
# Parameter init (deterministic, synthetic), pre-packed once for the kernels
# ----------------------------------------------------------------------------
def init_params(key, embed_dim, mid_channels, in_channels=3):
    def conv_p(k, cout, cin, scale=0.05):
        k1, k2 = jax.random.split(k)
        w = jax.random.normal(k1, (cout, cin, 3, 3), jnp.float32) * scale
        b = jax.random.normal(k2, (cout,), jnp.float32) * scale
        return prep_conv(w, b)

    keys = jax.random.split(key, 16)
    p = {
        'conv_first': conv_p(keys[0], embed_dim, in_channels),
        'conv_before_upsample': conv_p(keys[1], mid_channels, embed_dim),
        'upconv1': conv_p(keys[2], mid_channels * 4, mid_channels),
        'upconv2': conv_p(keys[3], 64 * 4, mid_channels),
        'conv_hr': conv_p(keys[4], 64, 64),
        'conv_last': conv_p(keys[5], 3, 64),
        # TODO(synk): SpyNet4Levels weights/source not available; tiny conv flow stand-in.
        'spynet': conv_p(keys[6], 2, 2 * in_channels, scale=0.02),
    }
    for i, m in enumerate(['backward_1', 'forward_1', 'backward_2', 'forward_2']):
        # TODO(synk): SwinIRFM weights/source not available; fusion-conv stand-in per branch.
        p[m] = conv_p(keys[7 + i], embed_dim, 3 * embed_dim)
    return p


# ----------------------------------------------------------------------------
# MIA-VSR forward (control flow matches the PyTorch module)
# ----------------------------------------------------------------------------
def patch_align_standin(cond_n2, cond_n1, feat_current, p):
    """TODO(synk): SwinIRFM not provided; Pallas fusion conv + residual, mask = channel energy."""
    x = jnp.concatenate([cond_n2, cond_n1, feat_current], axis=-1)
    feat = conv3x3(x, p, act=True) + feat_current
    n, h, w, C = feat.shape
    predmask = channel_sq_sum(feat.reshape(n * h * w, C)).reshape(n, h, w)[:, None]
    return feat, predmask


def propagate(feats, flows, module_name, params):
    n, tm1, h, w, _ = flows.shape
    t = tm1
    frame_idx = list(range(0, t + 1))
    flow_idx = list(range(-1, t))
    mapping_idx = list(range(0, len(feats['spatial'])))
    mapping_idx += mapping_idx[::-1]
    pred = []
    if 'backward' in module_name:
        frame_idx = frame_idx[::-1]
        flow_idx = frame_idx
    src_key = {'backward_1': 'spatial', 'forward_1': 'backward_1',
               'backward_2': 'forward_1', 'forward_2': 'backward_2'}[module_name]
    feat_prop = None
    for i, idx in enumerate(frame_idx):
        feat_current = feats[src_key][mapping_idx[idx]]
        if i > 0:
            flow_n1 = flows[:, flow_idx[i]]
            cond_n1 = flow_warp_avg_patch(feat_prop, flow_n1)
            cond_n2 = cond_n1
            if i > 1:
                feat_n2 = feats[module_name][-2]
                flow_n2 = flows[:, flow_idx[i - 1]]
                flow_n2 = flow_n1 + flow_warp_bilinear(flow_n2, flow_n1)
                cond_n2 = flow_warp_avg_patch(feat_n2, flow_n2)
            feat_prop, predmask = patch_align_standin(
                cond_n2, cond_n1, feat_current, params[module_name])
            pred.append(predmask)
        if i == 0:
            feat_prop, predmask = patch_align_standin(
                feat_current, feat_current, feat_current, params[module_name])
            pred.append(predmask)
        feats[module_name].append(feat_prop)
    if 'backward' in module_name:
        feats[module_name] = feats[module_name][::-1]
    return feats, pred


def upsample_frames(lqs_nhwc, feats, params):
    """All t frames batched into one M dimension per conv layer (single pallas_call each)."""
    n, t, h, w, c = lqs_nhwc.shape
    C = feats['forward_2'][0].shape[-1]
    hr = jnp.stack(feats['forward_2'], axis=1).reshape(n * t, h, w, C)
    hr = conv3x3(hr, params['conv_before_upsample'])
    # lrelu(pixel_shuffle(conv)) == pixel_shuffle(lrelu(conv)): activation fused in kernel
    hr = pixel_shuffle_nhwc(conv3x3(hr, params['upconv1'], act=True), 2)
    hr = pixel_shuffle_nhwc(conv3x3(hr, params['upconv2'], act=True), 2)
    hr = conv3x3(hr, params['conv_hr'], act=True)
    hr = conv3x3(hr, params['conv_last'])
    hr = hr + bilinear_upsample_x4(lqs_nhwc.reshape(n * t, h, w, c))
    return hr.reshape(n, t, 4 * h, 4 * w, c)


def mia_vsr_forward(lqs, params, embed_dim, mid_channels, use_mask=True):
    n, t, c, h, w = lqs.shape
    assert h >= 32 and w >= 32, 'SpyNet inputs must be at least 32x32'
    lqs_nhwc = jnp.transpose(lqs, (0, 1, 3, 4, 2))

    # check_if_mirror_extended: only taken for even-length sequences (as in the
    # reference); note this forces one host sync in that case.
    is_mirror = False
    if t % 2 == 0:
        l1, l2 = jnp.split(lqs, 2, axis=1)
        is_mirror = bool(jnp.sum((l1 - l2[:, ::-1]) ** 2) == 0)

    # conv_first over all frames, batched into one kernel call
    feats_ = conv3x3(lqs_nhwc.reshape(n * t, h, w, c), params['conv_first'])
    feats_ = feats_.reshape(n, t, h, w, embed_dim)
    feats = {'spatial': [feats_[:, i] for i in range(t)]}

    # compute_flow  (TODO(synk): SpyNet4Levels replaced by a Pallas conv flow stand-in)
    lqs_1 = lqs_nhwc[:, :-1].reshape(n * (t - 1), h, w, c)
    lqs_2 = lqs_nhwc[:, 1:].reshape(n * (t - 1), h, w, c)
    flows_backward = conv3x3(jnp.concatenate([lqs_1, lqs_2], axis=-1),
                             params['spynet']).reshape(n, t - 1, h, w, 2)
    if is_mirror:
        flows_forward = None
    else:
        flows_forward = conv3x3(jnp.concatenate([lqs_2, lqs_1], axis=-1),
                                params['spynet']).reshape(n, t - 1, h, w, 2)

    pred_all = []
    for iter_ in [1, 2]:
        for direction in ['backward', 'forward']:
            module = f'{direction}_{iter_}'
            feats[module] = []
            if direction == 'backward':
                flows = flows_backward
            elif flows_forward is not None:
                flows = flows_forward
            else:
                flows = flows_backward[:, ::-1]
            feats, pred = propagate(feats, flows, module, params)
            pred_all.append(pred)

    if not use_mask:
        pred_all = None

    # anchor features: sum of squares over the channel axis (Pallas reduction)
    anchor = {}
    for key in ['backward_1', 'forward_1', 'backward_2', 'forward_2']:
        stacked = jnp.stack(feats[key], axis=0)                 # (t, n, h, w, C)
        T, N, H, W, C = stacked.shape
        ssq = channel_sq_sum(stacked.reshape(T * N * H * W, C))
        anchor[key] = ssq.reshape(T, N, H, W)[:, :, None]        # (t, n, 1, h, w)

    out = upsample_frames(lqs_nhwc, feats, params)               # (n, t, 4h, 4w, 3)
    return jnp.transpose(out, (0, 1, 4, 2, 3)), pred_all, anchor


# ----------------------------------------------------------------------------
if __name__ == "__main__":
    key = jax.random.PRNGKey(0)
    n, t, c, h, w = 1, 3, 3, 32, 32          # h, w >= 32 per module assert
    embed_dim, mid_channels = 16, 16
    k_in, k_par = jax.random.split(key)
    lqs = jax.random.uniform(k_in, (n, t, c, h, w), jnp.float32)
    params = init_params(k_par, embed_dim, mid_channels, in_channels=c)

    out, pred_all, anchor = mia_vsr_forward(lqs, params, embed_dim, mid_channels,
                                            use_mask=True)
    jax.block_until_ready((out, pred_all, anchor))

    assert out.shape == (n, t, c, 4 * h, 4 * w), out.shape
    assert all(anchor[k].shape == (t, n, 1, h, w) for k in anchor)
    assert len(pred_all) == 4 and all(len(p) == t for p in pred_all)
    print("KERNEL_OK")
</pallas_src>

<mosaic_0001>
module attributes {stable_mosaic.version = 11 : i64} {
  func.func @_conv_kernel(%arg0: i32, %arg1: i32, %arg2: memref<1x1088x9xbf16, #tpu.memory_space<vmem>>, %arg3: memref<3x9x16xbf16, #tpu.memory_space<vmem>>, %arg4: memref<1x16xf32, #tpu.memory_space<vmem>>, %arg5: memref<1x1024x16xf32, #tpu.memory_space<vmem>>) attributes {dimension_semantics = [#tpu.dimension_semantics<parallel>, #tpu.dimension_semantics<parallel>], iteration_bounds = array<i64: 3, 1>, scalar_prefetch = 0 : i64, scratch_operands = 0 : i64, tpu.core_type = #tpu.core_type<tc>, window_params = [{transform_indices = @transform_0, window_bounds = array<i64: 1, 1088, 9>}, {pipeline_mode = #tpu.pipeline_mode<synchronous>, transform_indices = @transform_1, window_bounds = array<i64: 3, 9, 16>}, {pipeline_mode = #tpu.pipeline_mode<synchronous>, transform_indices = @transform_2, window_bounds = array<i64: 1, 16>}, {transform_indices = @transform_3, window_bounds = array<i64: 1, 1024, 16>}]} {
    %c32_i32 = arith.constant 32 : i32
    %0 = arith.muli %arg1, %c32_i32 : i32
    %c32_i32_0 = arith.constant 32 : i32
    %1 = arith.muli %0, %c32_i32_0 : i32
    %c0_i32 = arith.constant 0 : i32
    %2 = arith.addi %1, %c0_i32 : i32
    %3 = tpu.assume_multiple %2, 8 : i32
    %c0 = arith.constant 0 : index
    %4 = arith.index_cast %3 : i32 to index
    %c0_1 = arith.constant 0 : index
    %5 = vector.load %arg2[%c0, %4, %c0_1] : memref<1x1088x9xbf16, #tpu.memory_space<vmem>>, vector<1x1024x9xbf16>
    %6 = vector.shape_cast %5 : vector<1x1024x9xbf16> to vector<1024x9xbf16>
    %c0_2 = arith.constant 0 : index
    %c0_3 = arith.constant 0 : index
    %c0_4 = arith.constant 0 : index
    %7 = vector.load %arg3[%c0_2, %c0_3, %c0_4] : memref<3x9x16xbf16, #tpu.memory_space<vmem>>, vector<1x9x16xbf16>
    %8 = vector.shape_cast %7 : vector<1x9x16xbf16> to vector<9x16xbf16>
    %cst = arith.constant dense<0.000000e+00> : vector<1024x16xf32>
    %9 = tpu.matmul %6, %8, %cst {dimension_numbers = #tpu.dot_dimension_numbers<[1], [0], [0], [1], [0, 0, 1, 1], [], []>} : vector<1024x9xbf16>, vector<9x16xbf16>, vector<1024x16xf32> -> vector<1024x16xf32>
    %c32_i32_5 = arith.constant 32 : i32
    %10 = arith.addi %1, %c32_i32_5 : i32
    %11 = tpu.assume_multiple %10, 8 : i32
    %c0_6 = arith.constant 0 : index
    %12 = arith.index_cast %11 : i32 to index
    %c0_7 = arith.constant 0 : index
    %13 = vector.load %arg2[%c0_6, %12, %c0_7] : memref<1x1088x9xbf16, #tpu.memory_space<vmem>>, vector<1x1024x9xbf16>
    %14 = vector.shape_cast %13 : vector<1x1024x9xbf16> to vector<1024x9xbf16>
    %c1 = arith.constant 1 : index
    %c0_8 = arith.constant 0 : index
    %c0_9 = arith.constant 0 : index
    %15 = vector.load %arg3[%c1, %c0_8, %c0_9] : memref<3x9x16xbf16, #tpu.memory_space<vmem>>, vector<1x9x16xbf16>
    %16 = vector.shape_cast %15 : vector<1x9x16xbf16> to vector<9x16xbf16>
    %cst_10 = arith.constant dense<0.000000e+00> : vector<1024x16xf32>
    %17 = tpu.matmul %14, %16, %cst_10 {dimension_numbers = #tpu.dot_dimension_numbers<[1], [0], [0], [1], [0, 0, 1, 1], [], []>} : vector<1024x9xbf16>, vector<9x16xbf16>, vector<1024x16xf32> -> vector<1024x16xf32>
    %18 = arith.addf %9, %17 : vector<1024x16xf32>
    %c64_i32 = arith.constant 64 : i32
    %19 = arith.addi %1, %c64_i32 : i32
    %20 = tpu.assume_multiple %19, 8 : i32
    %c0_11 = arith.constant 0 : index
    %21 = arith.index_cast %20 : i32 to index
    %c0_12 = arith.constant 0 : index
    %22 = vector.load %arg2[%c0_11, %21, %c0_12] : memref<1x1088x9xbf16, #tpu.memory_space<vmem>>, vector<1x1024x9xbf16>
    %23 = vector.shape_cast %22 : vector<1x1024x9xbf16> to vector<1024x9xbf16>
    %c2 = arith.constant 2 : index
    %c0_13 = arith.constant 0 : index
    %c0_14 = arith.constant 0 : index
    %24 = vector.load %arg3[%c2, %c0_13, %c0_14] : memref<3x9x16xbf16, #tpu.memory_space<vmem>>, vector<1x9x16xbf16>
    %25 = vector.shape_cast %24 : vector<1x9x16xbf16> to vector<9x16xbf16>
    %cst_15 = arith.constant dense<0.000000e+00> : vector<1024x16xf32>
    %26 = tpu.matmul %23, %25, %cst_15 {dimension_numbers = #tpu.dot_dimension_numbers<[1], [0], [0], [1], [0, 0, 1, 1], [], []>} : vector<1024x9xbf16>, vector<9x16xbf16>, vector<1024x16xf32> -> vector<1024x16xf32>
    %27 = arith.addf %18, %26 : vector<1024x16xf32>
    %c0_16 = arith.constant 0 : index
    %c0_17 = arith.constant 0 : index
    %28 = vector.load %arg4[%c0_16, %c0_17] : memref<1x16xf32, #tpu.memory_space<vmem>>, vector<1x16xf32>
    %29 = vector.broadcast %28 : vector<1x16xf32> to vector<1024x16xf32>
    %30 = arith.addf %27, %29 : vector<1024x16xf32>
    %c0_18 = arith.constant 0 : index
    %c0_19 = arith.constant 0 : index
    %c0_20 = arith.constant 0 : index
    %31 = vector.load %arg5[%c0_18, %c0_19, %c0_20] : memref<1x1024x16xf32, #tpu.memory_space<vmem>>, vector<1x1024x16xf32>
    %32 = vector.shape_cast %31 : vector<1x1024x16xf32> to vector<1024x16xf32>
    %33 = vector.shape_cast %30 : vector<1024x16xf32> to vector<1x1024x16xf32>
    tpu.vector_store %arg5[%c0_18, %c0_19, %c0_20], %33 {strides = array<i32>} : memref<1x1024x16xf32, #tpu.memory_space<vmem>>, vector<1x1024x16xf32>,
    return
  }
  func.func @transform_0(%arg0: i32, %arg1: i32) -> (i32, i32, i32) {
    %c0_i32 = arith.constant 0 : i32
    %c0_i32_0 = arith.constant 0 : i32
    %c0_i32_1 = arith.constant 0 : i32
    return %arg0, %c0_i32, %c0_i32_0 : i32, i32, i32
  }
  func.func @transform_1(%arg0: i32, %arg1: i32) -> (i32, i32, i32) {
    %c0_i32 = arith.constant 0 : i32
    %c0_i32_0 = arith.constant 0 : i32
    %c0_i32_1 = arith.constant 0 : i32
    %c0_i32_2 = arith.constant 0 : i32
    return %c0_i32, %c0_i32_0, %c0_i32_1 : i32, i32, i32
  }
  func.func @transform_2(%arg0: i32, %arg1: i32) -> (i32, i32) {
    %c0_i32 = arith.constant 0 : i32
    %c0_i32_0 = arith.constant 0 : i32
    %c0_i32_1 = arith.constant 0 : i32
    return %c0_i32, %c0_i32_0 : i32, i32
  }
  func.func @transform_3(%arg0: i32, %arg1: i32) -> (i32, i32, i32) {
    %c0_i32 = arith.constant 0 : i32
    %c0_i32_0 = arith.constant 0 : i32
    return %arg0, %arg1, %c0_i32 : i32, i32, i32
  }
}

</mosaic_0001>

<bundles_post_ra>
// kernel: conv3x3.1
= control target key start
LH: loop header
LB: loop body
LE: loop exit
PB: predicated region body
PF: predicated region fallthrough
CT: control target
= control target key end

     0   :  { %s6050_s12 = smov 0   ;;  %s6052_s13 = smov 0   ;;  %s7070_s0 = inlined_call_operand.vmem [shape: bf16[3,1088,9], index: 0, kind: input, shape index: {}]   ;;  %s7071_s1 = inlined_call_operand.vmem [shape: bf16[3,9,16], index: 1, kind: input, shape index: {}]   ;;  %s7072_s2 = inlined_call_operand.vmem [shape: f32[1,16], index: 2, kind: input, shape index: {}]   ;;  %s7073_s3 = inlined_call_operand.vmem [shape: f32[3,1024,16], index: 3, kind: output, shape index: {}]  }
   0x1   :  { %s6054_s14 = smov 0  }
   0x2 LB: > { %s25_s15 = sadd.s32 1, %s6023_s13  ;;  %p4285_p0 = scmp.ge.s32.totalorder %s6027_s14, 1  ;;  %s6027_s14 = sphi %s6054_s14, %s13_s14   ;;  %s6023_s13 = sphi %s6052_s13, %s7101_s13   ;;  %s6019_s12 = sphi %s6050_s12, %s7100_s12  }
   0x3   : > { %p27_p1 = scmp.ge.s32.totalorder %s25_s15, 3  ;;  %p151_p2 = scmp.lt.s32.totalorder %s6027_s14, 4 }
   0x5   : > { %s7103_s15 = smov (%p27_p1, %s25_s15), 0  ;;  %p152_p3 = pnand %p4285_p0, %p151_p2 }
   0x7   : > { %155 = sbr.rel (%p152_p3) target bundleno = 620 (0x26c), region = 32 }
   0xe   : > { %v5809_v0 = vld [vmem:[%s7071_s1 + $0x8] sm:$0x1f]   ;;  %vm984_vm0 = vcmask 1043456   ;;  %vm985_vm1 = vcmask 1044480   ;;  %v5810_v1 = vld [vmem:[%s7071_s1] sm:$0x1f]  }
   0xf   : > { %p179_p4 = scmp.lt.s32.totalorder %s6019_s12, 2  ;;  %v6029_v2 = vmov 65535   ;;  %v5813_v5 = vld [vmem:[%s7071_s1 + $0x10] sm:$0x1f]   ;;  %vm791_vm2 = vcmask 72704   ;;  %vm4065_vm3 = vcmask 130048  }
  0x10   : > { %v986_v3 = vsel %vm984_vm0, 4294967295, %v6029_v2 }
  0x11   : > { %v987_v4 = vsel %vm985_vm1, %v986_v3, 0  ;;  %s7105_s12 = smov (!%p179_p4, %s6019_s12), 2 }
  0x12   : > { %v989_v6 = vand.u32 %v5809_v0, %v987_v4  ;;  %v2054_v7 = vand.u32 %v5810_v1, %v987_v4  ;;  %s5783_s22 = smul.u32 544, %s7105_s12  ;;  %v3255_v8 = vand.u32 %v5813_v5, %v987_v4  ;;  %s4939_s26 = sshll.u32 %s7105_s12, 10 }
  0x13   : > { %s6574_s4 = scalar_lea.vmem %s7073_s3, %s4939_s26 }
  0x14   : > { %5135 = vmatprep.subr.bf16.mxu1 %v989_v6  ;;  %5265 = vmatprep.subr.bf16.mxu0 %v2054_v7  ;;  %s6083_s25 = scalar_lea.vmem %s7070_s0, %s5783_s22 }
  0x15   : > { %5136 = vmatpush3.bf16.msra.mxu1 %v989_v6  ;;  %5266 = vmatpush3.bf16.msra.mxu0 %v2054_v7  ;;  %v5811_v9 = vld [vmem:[%s6083_s25 + $0x10] sm:$0xff]   ;;  %v5812_v10 = vld [vmem:[%s6083_s25] sm:$0xff]   ;;  %v5814_v11 = vld [vmem:[%s6083_s25 + $0x18] sm:$0xff]  }
  0x16   : > { %5525 = vmatprep.subr.bf16.mxu1 %v2054_v7  ;;  %5395 = vmatprep.subr.bf16.mxu0 %v3255_v8  ;;  %v5815_v12 = vld [vmem:[%s6083_s25 + $0x8] sm:$0xff]   ;;  %v5816_v13 = vld [vmem:[%s6083_s25 + $0x20] sm:$0xff]   ;;  %v5817_v14 = vld [vmem:[%s6083_s25 + $0x10] sm:$0xff]  }
  0x17   : > { %5137 = vmatprep.mubr.msk.bf16.mxu1 %vm791_vm2, %v5811_v9  ;;  %5267 = vmatprep.mubr.msk.bf16.mxu0 %vm791_vm2, %v5812_v10  ;;  %v5818_v15 = vld [vmem:[%s6083_s25 + $0x28] sm:$0xff]   ;;  %v5819_v16 = vld [vmem:[%s6083_s25 + $0x18] sm:$0xff]   ;;  %v5820_v17 = vld [vmem:[%s6083_s25 + $0x30] sm:$0xff]  }
  0x18   : > { %5138 = vmatmul.mubr.msk.bf16.vlgmr.msra.gmra.mrb[0].mxu1 %vm791_vm2, %v5814_v11  ;;  %5268 = vmatmul.mubr.msk.bf16.vlgmr.msra.gmra.mrb[0].mxu0 %vm791_vm2, %v5815_v12  ;;  %v5821_v18 = vld [vmem:[%s6083_s25 + $0x20] sm:$0xff]   ;;  %v5822_v19 = vld [vmem:[%s6083_s25 + $0x38] sm:$0xff]   ;;  %v5823_v20 = vld [vmem:[%s6083_s25 + $0x28] sm:$0xff]  }
  0x19   : > { %5526 = vmatpush3.bf16.msra.mxu1 %v2054_v7  ;;  %5396 = vmatpush3.bf16.msra.mxu0 %v3255_v8  ;;  %v5824_v21 = vld [vmem:[%s6083_s25 + $0x40] sm:$0xff]   ;;  %v5825_v22 = vld [vmem:[%s6083_s25 + $0x30] sm:$0xff]   ;;  %v5826_v23 = vld [vmem:[%s6083_s25 + $0x48] sm:$0xff]  }
  0x1a   : > { %5141 = vmatprep.mubr.msk.bf16.mxu1 %vm791_vm2, %v5816_v13  ;;  %5271 = vmatprep.mubr.msk.bf16.mxu0 %vm791_vm2, %v5817_v14  ;;  %v5827_v24 = vld [vmem:[%s6083_s25 + $0x38] sm:$0xff]   ;;  %v5828_v25 = vld [vmem:[%s6083_s25 + $0x50] sm:$0xff]   ;;  %v5829_v26 = vld [vmem:[%s6083_s25 + $0x40] sm:$0xff]  }
  0x1b   : > { %v5830_v27 = vld [vmem:[%s6083_s25 + $0x58] sm:$0xff]   ;;  %v5831_v28 = vld [vmem:[%s6083_s25 + $0x48] sm:$0xff]   ;;  %v5832_v29 = vld [vmem:[%s6083_s25 + $0x60] sm:$0xff]  }
  0x1c   : > { %v5833_v30 = vld [vmem:[%s6083_s25 + $0x50] sm:$0xff]   ;;  %v5834_v31 = vld [vmem:[%s6083_s25 + $0x68] sm:$0xff]   ;;  %v5835_v32 = vld [vmem:[%s6083_s25 + $0x58] sm:$0xff]  }
  0x1d   : > { %v5836_v33 = vld [vmem:[%s6083_s25 + $0x70] sm:$0xff]   ;;  %v5837_v34 = vld [vmem:[%s6083_s25 + $0x60] sm:$0xff]   ;;  %v5838_v35 = vld [vmem:[%s6083_s25 + $0x78] sm:$0xff]  }
  0x1e   : > { %v5839_v36 = vld [vmem:[%s6083_s25 + $0x68] sm:$0xff]   ;;  %v5840_v37 = vld [vmem:[%s6083_s25 + $0x80] sm:$0xff]   ;;  %v5841_v38 = vld [vmem:[%s6083_s25 + $0x70] sm:$0xff]  }
  0x1f   : > { %v5842_v39 = vld [vmem:[%s6083_s25 + $0x88] sm:$0xff]   ;;  %v5843_v40 = vld [vmem:[%s6083_s25 + $0x78] sm:$0xff]   ;;  %v5844_v41 = vld [vmem:[%s6083_s25 + $0x90] sm:$0xff]  }
  0x20   : > { %5142 = vmatmul.mubr.msk.bf16.gmra.mrb[4].mxu1 %vm791_vm2, %v5818_v15  ;;  %5272 = vmatmul.mubr.msk.bf16.gmra.mrb[4].mxu0 %vm791_vm2, %v5819_v16  ;;  %v5845_v42 = vld [vmem:[%s6083_s25 + $0x80] sm:$0xff]   ;;  %v5846_v43 = vld [vmem:[%s6083_s25 + $0x98] sm:$0xff]   ;;  %v5847_v44 = vld [vmem:[%s6083_s25 + $0x88] sm:$0xff]  }
  0x21   : > { %5145 = vmatprep.mubr.msk.bf16.mxu1 %vm791_vm2, %v5820_v17  ;;  %5275 = vmatprep.mubr.msk.bf16.mxu0 %vm791_vm2, %v5821_v18  ;;  %v5848_v45 = vld [vmem:[%s6083_s25 + $0xa0] sm:$0xff]   ;;  %v5849_v46 = vld [vmem:[%s6083_s25 + $0x90] sm:$0xff]   ;;  %v5850_v47 = vld [vmem:[%s6083_s25 + $0xa8] sm:$0xff]  }
  0x22   : > { %v5851_v48 = vld [vmem:[%s6083_s25 + $0x98] sm:$0xff]   ;;  %v5852_v49 = vld [vmem:[%s6083_s25 + $0xb0] sm:$0xff]   ;;  %v5853_v50 = vld [vmem:[%s6083_s25 + $0xa0] sm:$0xff]  }
  0x23   : > { %v5854_v51 = vld [vmem:[%s6083_s25 + $0xb8] sm:$0xff]   ;;  %v5855_v52 = vld [vmem:[%s6083_s25 + $0xa8] sm:$0xff]   ;;  %v5856_v53 = vld [vmem:[%s6083_s25 + $0xc0] sm:$0xff]  }
  0x24   : > { %v5857_v54 = vld [vmem:[%s6083_s25 + $0xb0] sm:$0xff]   ;;  %v5858_v55 = vld [vmem:[%s6083_s25 + $0xc8] sm:$0xff]   ;;  %v5859_v56 = vld [vmem:[%s6083_s25 + $0xb8] sm:$0xff]  }
  0x25   : > { %v5860_v57 = vld [vmem:[%s6083_s25 + $0xd0] sm:$0xff]   ;;  %v5861_v58 = vld [vmem:[%s6083_s25 + $0xc0] sm:$0xff]   ;;  %v5862_v59 = vld [vmem:[%s6083_s25 + $0xd8] sm:$0xff]  }
  0x26   : > { %v5863_v60 = vld [vmem:[%s6083_s25 + $0xc8] sm:$0xff]   ;;  %v5864_v61 = vld [vmem:[%s6083_s25 + $0xe0] sm:$0xff]   ;;  %v5865_v62 = vld [vmem:[%s6083_s25 + $0xd0] sm:$0xff]  }
  0x27   : > { %v5866_v63 = vld [vmem:[%s6083_s25 + $0xe8] sm:$0xff]   ;;  %v5867_v0 = vld [vmem:[%s6083_s25 + $0xd8] sm:$0xff]   ;;  %v5868_v1 = vld [vmem:[%s6083_s25 + $0xf0] sm:$0xff]  }
  0x28   : > { %5146 = vmatmul.mubr.msk.bf16.gmra.mrb[8].mxu1 %vm791_vm2, %v5822_v19  ;;  %5276 = vmatmul.mubr.msk.bf16.gmra.mrb[8].mxu0 %vm791_vm2, %v5823_v20  ;;  %v5869_v2 = vld [vmem:[%s6083_s25 + $0xe0] sm:$0xff]   ;;  %v5870_v3 = vld [vmem:[%s6083_s25 + $0xf8] sm:$0xff]   ;;  %v5871_v4 = vld [vmem:[%s6083_s25 + $0xe8] sm:$0xff]  }
  0x29   : > { %5149 = vmatprep.mubr.msk.bf16.mxu1 %vm791_vm2, %v5824_v21  ;;  %5279 = vmatprep.mubr.msk.bf16.mxu0 %vm791_vm2, %v5825_v22  ;;  %v5872_v5 = vld [vmem:[%s6083_s25 + $0x100] sm:$0xff]   ;;  %v5873_v6 = vld [vmem:[%s6083_s25 + $0xf0] sm:$0xff]   ;;  %v5874_v7 = vld [vmem:[%s6083_s25 + $0x108] sm:$0xff]  }
  0x2a   : > { %v5875_v8 = vld [vmem:[%s6083_s25 + $0xf8] sm:$0xff]   ;;  %v5876_v9 = vld [vmem:[%s6083_s25 + $0x110] sm:$0xff]   ;;  %v5877_v10 = vld [vmem:[%s6083_s25 + $0x20] sm:$0xff]  }
  0x2b   : > { %v5878_v11 = vld [vmem:[%s6083_s25 + $0x118] sm:$0xff]   ;;  %v5879_v12 = vld [vmem:[%s6083_s25 + $0x28] sm:$0xff]   ;;  %v5880_v13 = vld [vmem:[%s6083_s25 + $0x120] sm:$0xff]  }
  0x2c   : > { %v5881_v14 = vld [vmem:[%s6083_s25 + $0x30] sm:$0xff]   ;;  %v5882_v15 = vld [vmem:[%s6083_s25 + $0x128] sm:$0xff]   ;;  %v5883_v16 = vld [vmem:[%s6083_s25 + $0x38] sm:$0xff]  }
  0x2d   : > { %v5884_v17 = vld [vmem:[%s6083_s25 + $0x130] sm:$0xff]   ;;  %v5885_v18 = vld [vmem:[%s6083_s25 + $0x40] sm:$0xff]   ;;  %v5886_v19 = vld [vmem:[%s6083_s25 + $0x138] sm:$0xff]  }
  0x2e   : > { %v5887_v20 = vld [vmem:[%s6083_s25 + $0x48] sm:$0xff]   ;;  %v5888_v21 = vld [vmem:[%s6083_s25 + $0x140] sm:$0xff]   ;;  %v5889_v22 = vld [vmem:[%s6083_s25 + $0x50] sm:$0xff]  }
  0x30   : > { %5150 = vmatmul.mubr.msk.bf16.gmra.mrb[12].mxu1 %vm791_vm2, %v5826_v23  ;;  %5280 = vmatmul.mubr.msk.bf16.gmra.mrb[12].mxu0 %vm791_vm2, %v5827_v24  ;;  %v5890_v23 = vld [vmem:[%s6083_s25 + $0x148] sm:$0xff]   ;;  %v5891_v24 = vld [vmem:[%s6083_s25 + $0x58] sm:$0xff]  }
  0x31   : > { %5153 = vmatprep.mubr.msk.bf16.mxu1 %vm791_vm2, %v5828_v25  ;;  %5283 = vmatprep.mubr.msk.bf16.mxu0 %vm791_vm2, %v5829_v26  ;;  %v5892_v25 = vld [vmem:[%s6083_s25 + $0x150] sm:$0xff]   ;;  %v5893_v26 = vld [vmem:[%s6083_s25 + $0x60] sm:$0xff]  }
  0x38   : > { %5154 = vmatmul.mubr.msk.bf16.gmra.mrb[16].mxu1 %vm791_vm2, %v5830_v27  ;;  %5284 = vmatmul.mubr.msk.bf16.gmra.mrb[16].mxu0 %vm791_vm2, %v5831_v28  ;;  %v5894_v27 = vld [vmem:[%s6083_s25 + $0x158] sm:$0xff]   ;;  %v5895_v28 = vld [vmem:[%s6083_s25 + $0x68] sm:$0xff]  }
  0x39   : > { %5157 = vmatprep.mubr.msk.bf16.mxu1 %vm791_vm2, %v5832_v29  ;;  %5287 = vmatprep.mubr.msk.bf16.mxu0 %vm791_vm2, %v5833_v30  ;;  %v5896_v29 = vld [vmem:[%s6083_s25 + $0x160] sm:$0xff]   ;;  %v5897_v30 = vld [vmem:[%s6083_s25 + $0x70] sm:$0xff]  }
  0x40   : > { %5158 = vmatmul.mubr.msk.bf16.gmra.mrb[20].mxu1 %vm791_vm2, %v5834_v31  ;;  %5288 = vmatmul.mubr.msk.bf16.gmra.mrb[20].mxu0 %vm791_vm2, %v5835_v32  ;;  %v5898_v31 = vld [vmem:[%s6083_s25 + $0x168] sm:$0xff]   ;;  %v5899_v32 = vld [vmem:[%s6083_s25 + $0x78] sm:$0xff]  }
  0x41   : > { %5161 = vmatprep.mubr.msk.bf16.mxu1 %vm791_vm2, %v5836_v33  ;;  %5291 = vmatprep.mubr.msk.bf16.mxu0 %vm791_vm2, %v5837_v34  ;;  %v5900_v33 = vld [vmem:[%s6083_s25 + $0x170] sm:$0xff]   ;;  %v5901_v34 = vld [vmem:[%s6083_s25 + $0x80] sm:$0xff]  }
  0x48   : > { %5162 = vmatmul.mubr.msk.bf16.gmra.mrb[24].mxu1 %vm791_vm2, %v5838_v35  ;;  %5292 = vmatmul.mubr.msk.bf16.gmra.mrb[24].mxu0 %vm791_vm2, %v5839_v36  ;;  %v5902_v35 = vld [vmem:[%s6083_s25 + $0x178] sm:$0xff]   ;;  %v5903_v36 = vld [vmem:[%s6083_s25 + $0x88] sm:$0xff]  }
  0x49   : > { %5165 = vmatprep.mubr.msk.bf16.mxu1 %vm791_vm2, %v5840_v37  ;;  %5295 = vmatprep.mubr.msk.bf16.mxu0 %vm791_vm2, %v5841_v38  ;;  %v5904_v37 = vld [vmem:[%s6083_s25 + $0x180] sm:$0xff]   ;;  %v5905_v38 = vld [vmem:[%s6083_s25 + $0x90] sm:$0xff]  }
  0x50   : > { %5166 = vmatmul.mubr.msk.bf16.gmra.mrb[28].mxu1 %vm791_vm2, %v5842_v39  ;;  %5296 = vmatmul.mubr.msk.bf16.gmra.mrb[28].mxu0 %vm791_vm2, %v5843_v40  ;;  %v5906_v39 = vld [vmem:[%s6083_s25 + $0x188] sm:$0xff]   ;;  %v5907_v40 = vld [vmem:[%s6083_s25 + $0x98] sm:$0xff]  }
  0x51   : > { %5169 = vmatprep.mubr.msk.bf16.mxu1 %vm791_vm2, %v5844_v41  ;;  %5299 = vmatprep.mubr.msk.bf16.mxu0 %vm791_vm2, %v5845_v42  ;;  %v5908_v41 = vld [vmem:[%s6083_s25 + $0x190] sm:$0xff]   ;;  %v5909_v42 = vld [vmem:[%s6083_s25 + $0xa0] sm:$0xff]  }
  0x58   : > { %5170 = vmatmul.mubr.msk.bf16.gmra.mrb[32].mxu1 %vm791_vm2, %v5846_v43  ;;  %5300 = vmatmul.mubr.msk.bf16.gmra.mrb[32].mxu0 %vm791_vm2, %v5847_v44  ;;  %v5910_v43 = vld [vmem:[%s6083_s25 + $0x198] sm:$0xff]   ;;  %v5911_v44 = vld [vmem:[%s6083_s25 + $0xa8] sm:$0xff]  }
  0x59   : > { %5173 = vmatprep.mubr.msk.bf16.mxu1 %vm791_vm2, %v5848_v45  ;;  %5303 = vmatprep.mubr.msk.bf16.mxu0 %vm791_vm2, %v5849_v46  ;;  %v5912_v45 = vld [vmem:[%s6083_s25 + $0x1a0] sm:$0xff]   ;;  %v5913_v46 = vld [vmem:[%s6083_s25 + $0xb0] sm:$0xff]  }
  0x60   : > { %5174 = vmatmul.mubr.msk.bf16.gmra.mrb[36].mxu1 %vm791_vm2, %v5850_v47  ;;  %5304 = vmatmul.mubr.msk.bf16.gmra.mrb[36].mxu0 %vm791_vm2, %v5851_v48  ;;  %v5914_v47 = vld [vmem:[%s6083_s25 + $0x1a8] sm:$0xff]   ;;  %v5915_v48 = vld [vmem:[%s6083_s25 + $0xb8] sm:$0xff]  }
  0x61   : > { %5177 = vmatprep.mubr.msk.bf16.mxu1 %vm791_vm2, %v5852_v49  ;;  %5307 = vmatprep.mubr.msk.bf16.mxu0 %vm791_vm2, %v5853_v50  ;;  %v5916_v49 = vld [vmem:[%s6083_s25 + $0x1b0] sm:$0xff]   ;;  %v5917_v50 = vld [vmem:[%s6083_s25 + $0xc0] sm:$0xff]  }
  0x68   : > { %5178 = vmatmul.mubr.msk.bf16.gmra.mrb[40].mxu1 %vm791_vm2, %v5854_v51  ;;  %5308 = vmatmul.mubr.msk.bf16.gmra.mrb[40].mxu0 %vm791_vm2, %v5855_v52  ;;  %v5918_v51 = vld [vmem:[%s6083_s25 + $0x1b8] sm:$0xff]   ;;  %v5919_v52 = vld [vmem:[%s6083_s25 + $0xc8] sm:$0xff]  }
  0x69   : > { %5181 = vmatprep.mubr.msk.bf16.mxu1 %vm791_vm2, %v5856_v53  ;;  %5311 = vmatprep.mubr.msk.bf16.mxu0 %vm791_vm2, %v5857_v54  ;;  %v5920_v53 = vld [vmem:[%s6083_s25 + $0x1c0] sm:$0xff]   ;;  %v5921_v54 = vld [vmem:[%s6083_s25 + $0xd0] sm:$0xff]  }
  0x70   : > { %5182 = vmatmul.mubr.msk.bf16.gmra.mrb[44].mxu1 %vm791_vm2, %v5858_v55  ;;  %5312 = vmatmul.mubr.msk.bf16.gmra.mrb[44].mxu0 %vm791_vm2, %v5859_v56 }
  0x71   : > { %5185 = vmatprep.mubr.msk.bf16.mxu1 %vm791_vm2, %v5860_v57  ;;  %5315 = vmatprep.mubr.msk.bf16.mxu0 %vm791_vm2, %v5861_v58  ;;  %v5922_v57 = vld [vmem:[%s6083_s25 + $0x1c8] sm:$0xff]  }
  0x78   : > { %5186 = vmatmul.mubr.msk.bf16.gmra.mrb[48].mxu1 %vm791_vm2, %v5862_v59  ;;  %5316 = vmatmul.mubr.msk.bf16.gmra.mrb[48].mxu0 %vm791_vm2, %v5863_v60  ;;  %v5923_v59 = vld [vmem:[%s6083_s25 + $0xd8] sm:$0xff]   ;;  %v5924_v60 = vld [vmem:[%s6083_s25 + $0x1d0] sm:$0xff]  }
  0x79   : > { %5189 = vmatprep.mubr.msk.bf16.mxu1 %vm791_vm2, %v5864_v61  ;;  %5319 = vmatprep.mubr.msk.bf16.mxu0 %vm791_vm2, %v5865_v62  ;;  %v5925_v62 = vld [vmem:[%s6083_s25 + $0xe0] sm:$0xff]  }
  0x80   : > { %5190 = vmatmul.mubr.msk.bf16.gmra.mrb[52].mxu1 %vm791_vm2, %v5866_v63  ;;  %5320 = vmatmul.mubr.msk.bf16.gmra.mrb[52].mxu0 %vm791_vm2, %v5867_v0 }
  0x81   : > { %5193 = vmatprep.mubr.msk.bf16.mxu1 %vm791_vm2, %v5868_v1  ;;  %5323 = vmatprep.mubr.msk.bf16.mxu0 %vm791_vm2, %v5869_v2  ;;  %v5926_v1 = vld [vmem:[%s6083_s25 + $0x1d8] sm:$0xff]  }
  0x88   : > { %5194 = vmatmul.mubr.msk.bf16.gmra.mrb[56].mxu1 %vm791_vm2, %v5870_v3  ;;  %5324 = vmatmul.mubr.msk.bf16.gmra.mrb[56].mxu0 %vm791_vm2, %v5871_v4  ;;  %v5927_v3 = vld [vmem:[%s6083_s25 + $0xe8] sm:$0xff]   ;;  %v5928_v4 = vld [vmem:[%s6083_s25 + $0x1e0] sm:$0xff]  }
  0x89   : > { %5197 = vmatprep.mubr.msk.bf16.mxu1 %vm791_vm2, %v5872_v5  ;;  %5327 = vmatprep.mubr.msk.bf16.mxu0 %vm791_vm2, %v5873_v6  ;;  %v5929_v6 = vld [vmem:[%s6083_s25 + $0xf0] sm:$0xff]  }
  0x90   : > { %5198 = vmatmul.mubr.msk.bf16.gmra.mrb[60].mxu1 %vm791_vm2, %v5874_v7  ;;  %5328 = vmatmul.mubr.msk.bf16.gmra.mrb[60].mxu0 %vm791_vm2, %v5875_v8 }
  0x91   : > { %5201 = vmatprep.mubr.msk.bf16.mxu1 %vm791_vm2, %v5876_v9  ;;  %5397 = vmatprep.mubr.msk.bf16.mxu0 %vm791_vm2, %v5877_v10  ;;  %v5930_v9 = vld [vmem:[%s6083_s25 + $0x1e8] sm:$0xff]  }
  0x98   : > { %5202 = vmatmul.mubr.msk.bf16.gmra.mrb[64].mxu1 %vm791_vm2, %v5878_v11  ;;  %5398 = vmatmul.mubr.msk.bf16.vlgmr.msra.gmra.mrb[0].mxu0 %vm791_vm2, %v5879_v12  ;;  %v5931_v11 = vld [vmem:[%s6083_s25 + $0xf8] sm:$0xff]   ;;  %v5932_v12 = vld [vmem:[%s6083_s25 + $0x1f0] sm:$0xff]  }
  0x99   : > { %5205 = vmatprep.mubr.msk.bf16.mxu1 %vm791_vm2, %v5880_v13  ;;  %5401 = vmatprep.mubr.msk.bf16.mxu0 %vm791_vm2, %v5881_v14  ;;  %v5933_v14 = vld [vmem:[%s6083_s25 + $0x100] sm:$0xff]  }
  0xa0   : > { %5206 = vmatmul.mubr.msk.bf16.gmra.mrb[68].mxu1 %vm791_vm2, %v5882_v15  ;;  %5402 = vmatmul.mubr.msk.bf16.gmra.mrb[4].mxu0 %vm791_vm2, %v5883_v16 }
  0xa1   : > { %5209 = vmatprep.mubr.msk.bf16.mxu1 %vm791_vm2, %v5884_v17  ;;  %5405 = vmatprep.mubr.msk.bf16.mxu0 %vm791_vm2, %v5885_v18  ;;  %v5934_v17 = vld [vmem:[%s6083_s25 + $0x1f8] sm:$0xff]  }
  0xa8   : > { %5210 = vmatmul.mubr.msk.bf16.gmra.mrb[72].mxu1 %vm791_vm2, %v5886_v19  ;;  %5406 = vmatmul.mubr.msk.bf16.gmra.mrb[8].mxu0 %vm791_vm2, %v5887_v20  ;;  %v5935_v19 = vld [vmem:[%s6083_s25 + $0x108] sm:$0xff]   ;;  %v5936_v20 = vld [vmem:[%s6083_s25 + $0x200] sm:$0xff]  }
  0xa9   : > { %5213 = vmatprep.mubr.msk.bf16.mxu1 %vm791_vm2, %v5888_v21  ;;  %5409 = vmatprep.mubr.msk.bf16.mxu0 %vm791_vm2, %v5889_v22  ;;  %v5937_v22 = vld [vmem:[%s6083_s25 + $0x110] sm:$0xff]  }
  0xb0   : > { %5214 = vmatmul.mubr.msk.bf16.gmra.mrb[76].mxu1 %vm791_vm2, %v5890_v23  ;;  %5410 = vmatmul.mubr.msk.bf16.gmra.mrb[12].mxu0 %vm791_vm2, %v5891_v24 }
  0xb1   : > { %5217 = vmatprep.mubr.msk.bf16.mxu1 %vm791_vm2, %v5892_v25  ;;  %5413 = vmatprep.mubr.msk.bf16.mxu0 %vm791_vm2, %v5893_v26  ;;  %v5938_v25 = vld [vmem:[%s6083_s25 + $0x208] sm:$0xff]  }
  0xb8   : > { %5218 = vmatmul.mubr.msk.bf16.gmra.mrb[80].mxu1 %vm791_vm2, %v5894_v27  ;;  %5414 = vmatmul.mubr.msk.bf16.gmra.mrb[16].mxu0 %vm791_vm2, %v5895_v28  ;;  %v5939_v27 = vld [vmem:[%s6083_s25 + $0x118] sm:$0xff]   ;;  %v5940_v28 = vld [vmem:[%s6083_s25 + $0x100] sm:$0xff]  }
  0xb9   : > { %5221 = vmatprep.mubr.msk.bf16.mxu1 %vm791_vm2, %v5896_v29  ;;  %5417 = vmatprep.mubr.msk.bf16.mxu0 %vm791_vm2, %v5897_v30  ;;  %v5941_v30 = vld [vmem:[%s6083_s25 + $0x120] sm:$0xff]  }
  0xc0   : > { %5222 = vmatmul.mubr.msk.bf16.gmra.mrb[84].mxu1 %vm791_vm2, %v5898_v31  ;;  %5418 = vmatmul.mubr.msk.bf16.gmra.mrb[20].mxu0 %vm791_vm2, %v5899_v32 }
  0xc1   : > { %5225 = vmatprep.mubr.msk.bf16.mxu1 %vm791_vm2, %v5900_v33  ;;  %5421 = vmatprep.mubr.msk.bf16.mxu0 %vm791_vm2, %v5901_v34  ;;  %v5942_v33 = vld [vmem:[%s6083_s25 + $0x108] sm:$0xff]  }
  0xc8   : > { %5226 = vmatmul.mubr.msk.bf16.gmra.mrb[88].mxu1 %vm791_vm2, %v5902_v35  ;;  %5422 = vmatmul.mubr.msk.bf16.gmra.mrb[24].mxu0 %vm791_vm2, %v5903_v36  ;;  %v5943_v35 = vld [vmem:[%s6083_s25 + $0x128] sm:$0xff]   ;;  %v5944_v36 = vld [vmem:[%s6083_s25 + $0x110] sm:$0xff]  }
  0xc9   : > { %5229 = vmatprep.mubr.msk.bf16.mxu1 %vm791_vm2, %v5904_v37  ;;  %5425 = vmatprep.mubr.msk.bf16.mxu0 %vm791_vm2, %v5905_v38  ;;  %v5945_v38 = vld [vmem:[%s6083_s25 + $0x130] sm:$0xff]  }
  0xd0   : > { %5230 = vmatmul.mubr.msk.bf16.gmra.mrb[92].mxu1 %vm791_vm2, %v5906_v39  ;;  %5426 = vmatmul.mubr.msk.bf16.gmra.mrb[28].mxu0 %vm791_vm2, %v5907_v40 }
  0xd1   : > { %5233 = vmatprep.mubr.msk.bf16.mxu1 %vm791_vm2, %v5908_v41  ;;  %5429 = vmatprep.mubr.msk.bf16.mxu0 %vm791_vm2, %v5909_v42  ;;  %v5946_v41 = vld [vmem:[%s6083_s25 + $0x118] sm:$0xff]  }
  0xd8   : > { %5234 = vmatmul.mubr.msk.bf16.gmra.mrb[96].mxu1 %vm791_vm2, %v5910_v43  ;;  %5430 = vmatmul.mubr.msk.bf16.gmra.mrb[32].mxu0 %vm791_vm2, %v5911_v44  ;;  %v5947_v43 = vld [vmem:[%s6083_s25 + $0x138] sm:$0xff]   ;;  %v5948_v44 = vld [vmem:[%s6083_s25 + $0x120] sm:$0xff]  }
  0xd9   : > { %5237 = vmatprep.mubr.msk.bf16.mxu1 %vm791_vm2, %v5912_v45  ;;  %5433 = vmatprep.mubr.msk.bf16.mxu0 %vm791_vm2, %v5913_v46  ;;  %v5949_v46 = vld [vmem:[%s6083_s25 + $0x140] sm:$0xff]  }
  0xe0   : > { %5238 = vmatmul.mubr.msk.bf16.gmra.mrb[100].mxu1 %vm791_vm2, %v5914_v47  ;;  %5434 = vmatmul.mubr.msk.bf16.gmra.mrb[36].mxu0 %vm791_vm2, %v5915_v48 }
  0xe1   : > { %5241 = vmatprep.mubr.msk.bf16.mxu1 %vm791_vm2, %v5916_v49  ;;  %5437 = vmatprep.mubr.msk.bf16.mxu0 %vm791_vm2, %v5917_v50  ;;  %v5950_v49 = vld [vmem:[%s6083_s25 + $0x128] sm:$0xff]  }
  0xe8   : > { %5242 = vmatmul.mubr.msk.bf16.gmra.mrb[104].mxu1 %vm791_vm2, %v5918_v51  ;;  %5438 = vmatmul.mubr.msk.bf16.gmra.mrb[40].mxu0 %vm791_vm2, %v5919_v52  ;;  %v5951_v51 = vld [vmem:[%s6083_s25 + $0x148] sm:$0xff]   ;;  %v5952_v52 = vld [vmem:[%s6083_s25 + $0x130] sm:$0xff]  }
  0xe9   : > { %5245 = vmatprep.mubr.msk.bf16.mxu1 %vm791_vm2, %v5920_v53  ;;  %5441 = vmatprep.mubr.msk.bf16.mxu0 %vm791_vm2, %v5921_v54  ;;  %v5953_v54 = vld [vmem:[%s6083_s25 + $0x150] sm:$0xff]  }
  0xeb   : > { %v6305_v55 = vpop.f32.mrb[0].mxu1 }
  0xec   : > { %v6307_v56 = vpop.f32.mrb[1].mxu1 }
  0xed   : > { %v6310_v58 = vpop.f32.mrb[2].mxu1 }
  0xee   : > { %v6314_v61 = vpop.f32.mrb[3].mxu1 }
  0xf0   : > { %5246 = vmatmul.mubr.msk.bf16.gmra.mrb[108].mxu1 %vm791_vm2, %v5922_v57  ;;  %5442 = vmatmul.mubr.msk.bf16.gmra.mrb[44].mxu0 %vm791_vm2, %v5923_v59 }
  0xf1   : > { %5249 = vmatprep.mubr.msk.bf16.mxu1 %vm791_vm2, %v5924_v60  ;;  %5445 = vmatprep.mubr.msk.bf16.mxu0 %vm791_vm2, %v5925_v62  ;;  %v5954_v60 = vld [vmem:[%s6083_s25 + $0x138] sm:$0xff]  }
  0xf3   : > { %v6321_v63 = vpop.f32.mrb[4].mxu1 }
  0xf4   : > { %v6323_v0 = vpop.f32.mrb[5].mxu1 }
  0xf5   : > { %v6326_v2 = vpop.f32.mrb[6].mxu1 }
  0xf6   : > { %v6330_v5 = vpop.f32.mrb[7].mxu1 }
  0xf8   : > { %5250 = vmatmul.mubr.msk.bf16.gmra.mrb[112].mxu1 %vm791_vm2, %v5926_v1  ;;  %5446 = vmatmul.mubr.msk.bf16.gmra.mrb[48].mxu0 %vm791_vm2, %v5927_v3  ;;  %v5955_v1 = vld [vmem:[%s6083_s25 + $0x158] sm:$0xff]   ;;  %v5956_v3 = vld [vmem:[%s6083_s25 + $0x140] sm:$0xff]  }
  0xf9   : > { %5253 = vmatprep.mubr.msk.bf16.mxu1 %vm791_vm2, %v5928_v4  ;;  %5449 = vmatprep.mubr.msk.bf16.mxu0 %vm791_vm2, %v5929_v6  ;;  %v5957_v6 = vld [vmem:[%s6083_s25 + $0x160] sm:$0xff]  }
  0xfb   : > { %v6337_v7 = vpop.f32.mrb[8].mxu1 }
  0xfc   : > { %v6339_v8 = vpop.f32.mrb[9].mxu1 }
  0xfd   : > { %v6342_v10 = vpop.f32.mrb[10].mxu1 }
  0xfe   : > { %v6346_v13 = vpop.f32.mrb[11].mxu1 }
 0x100   : > { %5254 = vmatmul.mubr.msk.bf16.gmra.mrb[116].mxu1 %vm791_vm2, %v5930_v9  ;;  %5450 = vmatmul.mubr.msk.bf16.gmra.mrb[52].mxu0 %vm791_vm2, %v5931_v11 }
 0x101   : > { %5257 = vmatprep.mubr.msk.bf16.mxu1 %vm791_vm2, %v5932_v12  ;;  %5453 = vmatprep.mubr.msk.bf16.mxu0 %vm791_vm2, %v5933_v14  ;;  %v5958_v12 = vld [vmem:[%s6083_s25 + $0x148] sm:$0xff]  }
 0x103   : > { %v6353_v15 = vpop.f32.mrb[12].mxu1 }
 0x104   : > { %v6355_v16 = vpop.f32.mrb[13].mxu1 }
 0x105   : > { %v6358_v18 = vpop.f32.mrb[14].mxu1 }
 0x106   : > { %v6362_v21 = vpop.f32.mrb[15].mxu1 }
 0x108   : > { %5258 = vmatmul.mubr.msk.bf16.gmra.mrb[120].mxu1 %vm791_vm2, %v5934_v17  ;;  %5454 = vmatmul.mubr.msk.bf16.gmra.mrb[56].mxu0 %vm791_vm2, %v5935_v19  ;;  %v5959_v17 = vld [vmem:[%s6083_s25 + $0x168] sm:$0xff]   ;;  %v5960_v19 = vld [vmem:[%s6083_s25 + $0x150] sm:$0xff]  }
 0x109   : > { %5261 = vmatprep.mubr.msk.bf16.mxu1 %vm791_vm2, %v5936_v20  ;;  %5457 = vmatprep.mubr.msk.bf16.mxu0 %vm791_vm2, %v5937_v22  ;;  %v5961_v22 = vld [vmem:[%s6083_s25 + $0x170] sm:$0xff]  }
 0x10b   : > { %v6369_v23 = vpop.f32.mrb[16].mxu1 }
 0x10c   : > { %v6371_v24 = vpop.f32.mrb[17].mxu1 }
 0x10d   : > { %v6374_v26 = vpop.f32.mrb[18].mxu1 }
 0x10e   : > { %v6378_v29 = vpop.f32.mrb[19].mxu1 }
 0x110   : > { %5262 = vmatmul.mubr.msk.bf16.gmra.mrb[124].mxu1 %vm791_vm2, %v5938_v25  ;;  %5458 = vmatmul.mubr.msk.bf16.gmra.mrb[60].mxu0 %vm791_vm2, %v5939_v27 }
 0x111   : > { %5331 = vmatprep.mubr.msk.bf16.mxu1 %vm791_vm2, %v5940_v28  ;;  %5461 = vmatprep.mubr.msk.bf16.mxu0 %vm791_vm2, %v5941_v30  ;;  %v5962_v28 = vld [vmem:[%s6083_s25 + $0x158] sm:$0xff]  }
 0x113   : > { %v6385_v31 = vpop.f32.mrb[20].mxu1 }
 0x114   : > { %v6387_v32 = vpop.f32.mrb[21].mxu1 }
 0x115   : > { %v6390_v34 = vpop.f32.mrb[22].mxu1 }
 0x116   : > { %v6394_v37 = vpop.f32.mrb[23].mxu1 }
 0x118   : > { %5332 = vmatmul.mubr.msk.bf16.vlgmr.msra.gmra.mrb[64].mxu1 %vm791_vm2, %v5942_v33  ;;  %5462 = vmatmul.mubr.msk.bf16.gmra.mrb[64].mxu0 %vm791_vm2, %v5943_v35  ;;  %v5963_v33 = vld [vmem:[%s6083_s25 + $0x178] sm:$0xff]   ;;  %v5964_v35 = vld [vmem:[%s6083_s25 + $0x160] sm:$0xff]  }
 0x119   : > { %5335 = vmatprep.mubr.msk.bf16.mxu1 %vm791_vm2, %v5944_v36  ;;  %5465 = vmatprep.mubr.msk.bf16.mxu0 %vm791_vm2, %v5945_v38  ;;  %v5965_v38 = vld [vmem:[%s6083_s25 + $0x180] sm:$0xff]  }
 0x11b   : > { %v6401_v39 = vpop.f32.mrb[24].mxu1 }
 0x11c   : > { %v6403_v40 = vpop.f32.mrb[25].mxu1 }
 0x11d   : > { %v6406_v42 = vpop.f32.mrb[26].mxu1 }
 0x11e   : > { %v6410_v45 = vpop.f32.mrb[27].mxu1 }
 0x120   : > { %5336 = vmatmul.mubr.msk.bf16.gmra.mrb[68].mxu1 %vm791_vm2, %v5946_v41  ;;  %5466 = vmatmul.mubr.msk.bf16.gmra.mrb[68].mxu0 %vm791_vm2, %v5947_v43 }
 0x121   : > { %5339 = vmatprep.mubr.msk.bf16.mxu1 %vm791_vm2, %v5948_v44  ;;  %5469 = vmatprep.mubr.msk.bf16.mxu0 %vm791_vm2, %v5949_v46  ;;  %v5966_v44 = vld [vmem:[%s6083_s25 + $0x168] sm:$0xff]  }
 0x123   : > { %v6417_v47 = vpop.f32.mrb[28].mxu1 }
 0x124   : > { %v6419_v48 = vpop.f32.mrb[29].mxu1 }
 0x125   : > { %v6422_v50 = vpop.f32.mrb[30].mxu1 }
 0x126   : > { %v6426_v53 = vpop.f32.mrb[31].mxu1 }
 0x128   : > { %5340 = vmatmul.mubr.msk.bf16.gmra.mrb[72].mxu1 %vm791_vm2, %v5950_v49  ;;  %5470 = vmatmul.mubr.msk.bf16.gmra.mrb[72].mxu0 %vm791_vm2, %v5951_v51  ;;  %v5967_v49 = vld [vmem:[%s6083_s25 + $0x188] sm:$0xff]   ;;  %v5968_v51 = vld [vmem:[%s6083_s25 + $0x170] sm:$0xff]  }
 0x129   : > { %5343 = vmatprep.mubr.msk.bf16.mxu1 %vm791_vm2, %v5952_v52  ;;  %5473 = vmatprep.mubr.msk.bf16.mxu0 %vm791_vm2, %v5953_v54  ;;  %v5969_v54 = vld [vmem:[%s6083_s25 + $0x190] sm:$0xff]  }
 0x12b   : > { %v6433_v57 = vpop.f32.mrb[32].mxu1 }
 0x12c   : > { %v6435_v59 = vpop.f32.mrb[33].mxu1 }
 0x12d   : > { %v6438_v62 = vpop.f32.mrb[34].mxu1 }
 0x12e   : > { %v6442_v4 = vpop.f32.mrb[35].mxu1 }
 0x130   : > { %5344 = vmatmul.mubr.msk.bf16.gmra.mrb[76].mxu1 %vm791_vm2, %v5954_v60  ;;  %5474 = vmatmul.mubr.msk.bf16.gmra.mrb[76].mxu0 %vm791_vm2, %v5955_v1 }
 0x131   : > { %5347 = vmatprep.mubr.msk.bf16.mxu1 %vm791_vm2, %v5956_v3  ;;  %5477 = vmatprep.mubr.msk.bf16.mxu0 %vm791_vm2, %v5957_v6  ;;  %v5970_v3 = vld [vmem:[%s6083_s25 + $0x178] sm:$0xff]  }
 0x133   : > { %v6449_v9 = vpop.f32.mrb[36].mxu1 }
 0x134   : > { %v6451_v11 = vpop.f32.mrb[37].mxu1 }
 0x135   : > { %v6454_v14 = vpop.f32.mrb[38].mxu1 }
 0x136   : > { %v6458_v20 = vpop.f32.mrb[39].mxu1 }
 0x138   : > { %5348 = vmatmul.mubr.msk.bf16.gmra.mrb[80].mxu1 %vm791_vm2, %v5958_v12  ;;  %5478 = vmatmul.mubr.msk.bf16.gmra.mrb[80].mxu0 %vm791_vm2, %v5959_v17  ;;  %v5971_v12 = vld [vmem:[%s6083_s25 + $0x198] sm:$0xff]   ;;  %v5972_v17 = vld [vmem:[%s6083_s25 + $0x180] sm:$0xff]  }
 0x139   : > { %5351 = vmatprep.mubr.msk.bf16.mxu1 %vm791_vm2, %v5960_v19  ;;  %5481 = vmatprep.mubr.msk.bf16.mxu0 %vm791_vm2, %v5961_v22  ;;  %v5973_v22 = vld [vmem:[%s6083_s25 + $0x1a0] sm:$0xff]  }
 0x13b   : > { %v6465_v25 = vpop.f32.mrb[40].mxu1 }
 0x13c   : > { %v6467_v27 = vpop.f32.mrb[41].mxu1 }
 0x13d   : > { %v6470_v30 = vpop.f32.mrb[42].mxu1 }
 0x13e   : > { %v6474_v36 = vpop.f32.mrb[43].mxu1 }
 0x140   : > { %5352 = vmatmul.mubr.msk.bf16.gmra.mrb[84].mxu1 %vm791_vm2, %v5962_v28  ;;  %5482 = vmatmul.mubr.msk.bf16.gmra.mrb[84].mxu0 %vm791_vm2, %v5963_v33 }
 0x141   : > { %5355 = vmatprep.mubr.msk.bf16.mxu1 %vm791_vm2, %v5964_v35  ;;  %5485 = vmatprep.mubr.msk.bf16.mxu0 %vm791_vm2, %v5965_v38  ;;  %v5974_v35 = vld [vmem:[%s6083_s25 + $0x188] sm:$0xff]  }
 0x143   : > { %v6481_v41 = vpop.f32.mrb[44].mxu1 }
 0x144   : > { %v6483_v43 = vpop.f32.mrb[45].mxu1 }
 0x145   : > { %v6486_v46 = vpop.f32.mrb[46].mxu1 }
 0x146   : > { %v6490_v52 = vpop.f32.mrb[47].mxu1 }
 0x148   : > { %5356 = vmatmul.mubr.msk.bf16.gmra.mrb[88].mxu1 %vm791_vm2, %v5966_v44  ;;  %5486 = vmatmul.mubr.msk.bf16.gmra.mrb[88].mxu0 %vm791_vm2, %v5967_v49  ;;  %v5975_v44 = vld [vmem:[%s6083_s25 + $0x1a8] sm:$0xff]   ;;  %v5976_v49 = vld [vmem:[%s6083_s25 + $0x190] sm:$0xff]  }
 0x149   : > { %5359 = vmatprep.mubr.msk.bf16.mxu1 %vm791_vm2, %v5968_v51  ;;  %5489 = vmatprep.mubr.msk.bf16.mxu0 %vm791_vm2, %v5969_v54  ;;  %v5977_v54 = vld [vmem:[%s6083_s25 + $0x1b0] sm:$0xff]  }
 0x14b   : > { %v6497_v60 = vpop.f32.mrb[48].mxu1 }
 0x14c   : > { %v6499_v1 = vpop.f32.mrb[49].mxu1 }
 0x14d   : > { %v6502_v6 = vpop.f32.mrb[50].mxu1 }
 0x14e   : > { %v6506_v19 = vpop.f32.mrb[51].mxu1 }
 0x14f   : > { %7074 = vst [vmem:[#allocation2_spill] sm:$0xff] %v6506_v19 }
 0x150   : > { %5360 = vmatmul.mubr.msk.bf16.gmra.mrb[92].mxu1 %vm791_vm2, %v5970_v3  ;;  %5490 = vmatmul.mubr.msk.bf16.gmra.mrb[92].mxu0 %vm791_vm2, %v5971_v12 }
 0x151   : > { %5363 = vmatprep.mubr.msk.bf16.mxu1 %vm791_vm2, %v5972_v17  ;;  %5493 = vmatprep.mubr.msk.bf16.mxu0 %vm791_vm2, %v5973_v22  ;;  %v5978_v17 = vld [vmem:[%s6083_s25 + $0x198] sm:$0xff]  }
 0x153   : > { %v6513_v28 = vpop.f32.mrb[52].mxu1 }
 0x154   : > { %7075 = vst [vmem:[#allocation3_spill] sm:$0xff] %v6513_v28  ;;  %v6515_v33 = vpop.f32.mrb[53].mxu1 }
 0x155   : > { %7076 = vst [vmem:[#allocation4_spill] sm:$0xff] %v6515_v33  ;;  %v6518_v38 = vpop.f32.mrb[54].mxu1  ;;  %v5985_v33 = vld [vmem:[%s6083_s25 + $0x1d0] sm:$0xff]  }
 0x156   : > { %7077 = vst [vmem:[#allocation5_spill] sm:$0xff] %v6518_v38  ;;  %v6522_v51 = vpop.f32.mrb[55].mxu1  ;;  %v5980_v38 = vld [vmem:[%s6083_s25 + $0x1a0] sm:$0xff]  }
 0x157   : > { %7078 = vst [vmem:[#allocation6_spill] sm:$0xff] %v6522_v51  ;;  %v5979_v51 = vld [vmem:[%s6083_s25 + $0x1b8] sm:$0xff]  }
 0x158   : > { %5364 = vmatmul.mubr.msk.bf16.gmra.mrb[96].mxu1 %vm791_vm2, %v5974_v35  ;;  %5494 = vmatmul.mubr.msk.bf16.gmra.mrb[96].mxu0 %vm791_vm2, %v5975_v44  ;;  %v5981_v44 = vld [vmem:[%s6083_s25 + $0x1c0] sm:$0xff]  }
 0x159   : > { %5367 = vmatprep.mubr.msk.bf16.mxu1 %vm791_vm2, %v5976_v49  ;;  %5497 = vmatprep.mubr.msk.bf16.mxu0 %vm791_vm2, %v5977_v54 }
 0x15b   : > { %v6529_v3 = vpop.f32.mrb[56].mxu1 }
 0x15c   : > { %7079 = vst [vmem:[#allocation7_spill] sm:$0xff] %v6529_v3  ;;  %v6531_v12 = vpop.f32.mrb[57].mxu1  ;;  %v5984_v3 = vld [vmem:[%s6083_s25 + $0x1b0] sm:$0xff]  }
 0x15d   : > { %7080 = vst [vmem:[#allocation8_spill] sm:$0xff] %v6531_v12  ;;  %v6534_v22 = vpop.f32.mrb[58].mxu1 }
 0x15e   : > { %7081 = vst [vmem:[#allocation9_spill] sm:$0xff] %v6534_v22  ;;  %v6538_v35 = vpop.f32.mrb[59].mxu1  ;;  %v5982_v22 = vld [vmem:[%s6083_s25 + $0x1a8] sm:$0xff]  }
 0x15f   : > { %7082 = vst [vmem:[#allocation10_spill] sm:$0xff] %v6538_v35  ;;  %v5983_v35 = vld [vmem:[%s6083_s25 + $0x1c8] sm:$0xff]  }
 0x160   : > { %5368 = vmatmul.mubr.msk.bf16.gmra.mrb[100].mxu1 %vm791_vm2, %v5978_v17  ;;  %5498 = vmatmul.mubr.msk.bf16.gmra.mrb[100].mxu0 %vm791_vm2, %v5979_v51  ;;  %v6565_v51 = vld [vmem:[%s7072_s2] ss:$0 sm:$0xff] }
 0x161   : > { %5371 = vmatprep.mubr.msk.bf16.mxu1 %vm791_vm2, %v5980_v38  ;;  %5501 = vmatprep.mubr.msk.bf16.mxu0 %vm791_vm2, %v5981_v44  ;;  %v5986_v44 = vld [vmem:[%s6083_s25 + $0x1b8] sm:$0xff]  }
 0x163   : > { %v6545_v49 = vpop.f32.mrb[60].mxu1 }
 0x164   : > { %7083 = vst [vmem:[#allocation11_spill] sm:$0xff] %v6545_v49  ;;  %v6547_v54 = vpop.f32.mrb[61].mxu1 }
 0x165   : > { %7084 = vst [vmem:[#allocation12_spill] sm:$0xff] %v6547_v54  ;;  %v6550_v12 = vpop.f32.mrb[62].mxu1  ;;  %v5987_v54 = vld [vmem:[%s6083_s25 + $0x1d8] sm:$0xff]  }
 0x166   : > { %7085 = vst [vmem:[#allocation13_spill] sm:$0xff] %v6550_v12  ;;  %v6554_v17 = vpop.f32.mrb[63].mxu1 }
 0x167   : > { %7086 = vst [vmem:[#allocation14_spill] sm:$0xff] %v6554_v17 }
 0x168   : > { %5372 = vmatmul.mubr.msk.bf16.gmra.mrb[104].mxu1 %vm791_vm2, %v5982_v22  ;;  %5502 = vmatmul.mubr.msk.bf16.gmra.mrb[104].mxu0 %vm791_vm2, %v5983_v35  ;;  %v5988_v22 = vld [vmem:[%s6083_s25 + $0x1c0] sm:$0xff]  }
 0x169   : > { %5375 = vmatprep.mubr.msk.bf16.mxu1 %vm791_vm2, %v5984_v3  ;;  %5505 = vmatprep.mubr.msk.bf16.mxu0 %vm791_vm2, %v5985_v33  ;;  %v5989_v35 = vld [vmem:[%s6083_s25 + $0x1e0] sm:$0xff]  }
 0x16b   : > { %v5399_v38 = vpop.f32.mrb[0].mxu0 }
 0x16c   : > { %v5527_v17 = vadd.f32 %v5399_v38, %v6305_v55  ;;  %v3291_v12 = vpop.f32.mrb[1].mxu0 }
 0x16d   : > { %v5528_v33 = vadd.f32 %v3291_v12, %v6307_v56  ;;  %v5400_v3 = vpop.f32.mrb[2].mxu0  ;;  %v5990_v12 = vld [vmem:[%s6083_s25 + $0x1c8] sm:$0xff]  }
 0x16e   : > { %v3939_v49 = vadd.f32 %v5527_v17, %v6565_v51  ;;  %v5529_v55 = vadd.f32 %v5400_v3, %v6310_v58  ;;  %v3294_v38 = vpop.f32.mrb[3].mxu0 }
 0x16f   : > { %v3937_v28 = vadd.f32 %v5528_v33, %v6565_v51  ;;  %v5530_v19 = vadd.f32 %v3294_v38, %v6314_v61  ;;  %v5994_v38 = vld [vmem:[%s6083_s25 + $0x1d8] sm:$0xff]  }
 0x170   : > { %5376 = vmatmul.mubr.msk.bf16.gmra.mrb[108].mxu1 %vm791_vm2, %v5986_v44  ;;  %4068 = vst.msk [vmem:[%s6574_s4 + $0x10] sm:$0xff] %vm4065_vm3, %v3939_v49  ;;  %v3940_v56 = vadd.f32 %v5529_v55, %v6565_v51  ;;  %5506 = vmatmul.mubr.msk.bf16.gmra.mrb[108].mxu0 %vm791_vm2, %v5987_v54  ;;  %v5991_v54 = vld [vmem:[%s6083_s25 + $0x1e8] sm:$0xff]   ;;  %v5992_v44 = vld [vmem:[%s6083_s25 + $0x1d0] sm:$0xff]  }
 0x171   : > { %5379 = vmatprep.mubr.msk.bf16.mxu1 %vm791_vm2, %v5988_v22  ;;  %4066 = vst.msk [vmem:[%s6574_s4] sm:$0xff] %vm4065_vm3, %v3937_v28  ;;  %v3938_v58 = vadd.f32 %v5530_v19, %v6565_v51  ;;  %5509 = vmatprep.mubr.msk.bf16.mxu0 %vm791_vm2, %v5989_v35  ;;  %v5993_v19 = vld [vmem:[%s6083_s25 + $0x1f0] sm:$0xff]  }
 0x172   : > { %4069 = vst.msk [vmem:[%s6574_s4 + $0x18] sm:$0xff] %vm4065_vm3, %v3940_v56 }
 0x173   : > { %4067 = vst.msk [vmem:[%s6574_s4 + $0x8] sm:$0xff] %vm4065_vm3, %v3938_v58  ;;  %v5403_v61 = vpop.f32.mrb[4].mxu0 }
 0x174   : > { %v5531_v49 = vadd.f32 %v5403_v61, %v6321_v63  ;;  %v3307_v17 = vpop.f32.mrb[5].mxu0  ;;  %v5995_v61 = vld [vmem:[%s6083_s25 + $0x1f8] sm:$0xff]  }
 0x175   : > { %v5532_v22 = vadd.f32 %v3307_v17, %v6323_v0  ;;  %v5404_v28 = vpop.f32.mrb[6].mxu0 }
 0x176   : > { %v3943_v33 = vadd.f32 %v5531_v49, %v6565_v51  ;;  %v5533_v3 = vadd.f32 %v5404_v28, %v6326_v2  ;;  %v3310_v35 = vpop.f32.mrb[7].mxu0 }
 0x177   : > { %v3941_v55 = vadd.f32 %v5532_v22, %v6565_v51  ;;  %v5534_v63 = vadd.f32 %v3310_v35, %v6330_v5 }
 0x178   : > { %5380 = vmatmul.mubr.msk.bf16.gmra.mrb[112].mxu1 %vm791_vm2, %v5990_v12  ;;  %4072 = vst.msk [vmem:[%s6574_s4 + $0x30] sm:$0xff] %vm4065_vm3, %v3943_v33  ;;  %v3944_v0 = vadd.f32 %v5533_v3, %v6565_v51  ;;  %5510 = vmatmul.mubr.msk.bf16.gmra.mrb[112].mxu0 %vm791_vm2, %v5991_v54  ;;  %v5996_v12 = vld [vmem:[%s6083_s25 + $0x1e0] sm:$0xff]   ;;  %v5998_v33 = vld [vmem:[%s6083_s25 + $0x1e8] sm:$0xff]  }
 0x179   : > { %5383 = vmatprep.mubr.msk.bf16.mxu1 %vm791_vm2, %v5992_v44  ;;  %4070 = vst.msk [vmem:[%s6574_s4 + $0x20] sm:$0xff] %vm4065_vm3, %v3941_v55  ;;  %v3942_v2 = vadd.f32 %v5534_v63, %v6565_v51  ;;  %5513 = vmatprep.mubr.msk.bf16.mxu0 %vm791_vm2, %v5993_v19  ;;  %v5997_v54 = vld [vmem:[%s6083_s25 + $0x200] sm:$0xff]   ;;  %v5999_v55 = vld [vmem:[%s6083_s25 + $0x208] sm:$0xff]   ;;  %v6000_v63 = vld [vmem:[%s6083_s25 + $0x1f0] sm:$0xff]  }
 0x17a   : > { %4073 = vst.msk [vmem:[%s6574_s4 + $0x38] sm:$0xff] %vm4065_vm3, %v3944_v0 }
 0x17b   : > { %4071 = vst.msk [vmem:[%s6574_s4 + $0x28] sm:$0xff] %vm4065_vm3, %v3942_v2  ;;  %v5407_v5 = vpop.f32.mrb[8].mxu0 }
 0x17c   : > { %v5535_v56 = vadd.f32 %v5407_v5, %v6337_v7  ;;  %v3323_v58 = vpop.f32.mrb[9].mxu0  ;;  %v6001_v5 = vld [vmem:[%s6083_s25 + $0x210] sm:$0xff]  }
 0x17d   : > { %v5536_v49 = vadd.f32 %v3323_v58, %v6339_v8  ;;  %v5408_v17 = vpop.f32.mrb[10].mxu0 }
 0x17e   : > { %v3947_v44 = vadd.f32 %v5535_v56, %v6565_v51  ;;  %v5537_v22 = vadd.f32 %v5408_v17, %v6342_v10  ;;  %v3326_v28 = vpop.f32.mrb[11].mxu0 }
 0x17f   : > { %v3945_v19 = vadd.f32 %v5536_v49, %v6565_v51  ;;  %v5538_v7 = vadd.f32 %v3326_v28, %v6346_v13 }
 0x180   : > { %5384 = vmatmul.mubr.msk.bf16.gmra.mrb[116].mxu1 %vm791_vm2, %v5994_v38  ;;  %4076 = vst.msk [vmem:[%s6574_s4 + $0x50] sm:$0xff] %vm4065_vm3, %v3947_v44  ;;  %v3948_v8 = vadd.f32 %v5537_v22, %v6565_v51  ;;  %5514 = vmatmul.mubr.msk.bf16.gmra.mrb[116].mxu0 %vm791_vm2, %v5995_v61 }
 0x181   : > { %5387 = vmatprep.mubr.msk.bf16.mxu1 %vm791_vm2, %v5996_v12  ;;  %4074 = vst.msk [vmem:[%s6574_s4 + $0x40] sm:$0xff] %vm4065_vm3, %v3945_v19  ;;  %v3946_v10 = vadd.f32 %v5538_v7, %v6565_v51  ;;  %5517 = vmatprep.mubr.msk.bf16.mxu0 %vm791_vm2, %v5997_v54  ;;  %v6002_v12 = vld [vmem:[%s6083_s25 + $0x1f8] sm:$0xff]  }
 0x182   : > { %4077 = vst.msk [vmem:[%s6574_s4 + $0x58] sm:$0xff] %vm4065_vm3, %v3948_v8  ;;  %v6003_v54 = vld [vmem:[%s6083_s25 + $0x218] sm:$0xff]  }
 0x183   : > { %4075 = vst.msk [vmem:[%s6574_s4 + $0x48] sm:$0xff] %vm4065_vm3, %v3946_v10  ;;  %v5411_v13 = vpop.f32.mrb[12].mxu0 }
 0x184   : > { %v5539_v3 = vadd.f32 %v5411_v13, %v6353_v15  ;;  %v3339_v35 = vpop.f32.mrb[13].mxu0 }
 0x185   : > { %v5540_v0 = vadd.f32 %v3339_v35, %v6355_v16  ;;  %v5412_v2 = vpop.f32.mrb[14].mxu0 }
 0x186   : > { %v3951_v38 = vadd.f32 %v5539_v3, %v6565_v51  ;;  %v5541_v56 = vadd.f32 %v5412_v2, %v6358_v18  ;;  %v3342_v58 = vpop.f32.mrb[15].mxu0 }
 0x187   : > { %v3949_v61 = vadd.f32 %v5540_v0, %v6565_v51  ;;  %v5542_v15 = vadd.f32 %v3342_v58, %v6362_v21 }
 0x188   : > { %5388 = vmatmul.mubr.msk.bf16.gmra.mrb[120].mxu1 %vm791_vm2, %v5998_v33  ;;  %4080 = vst.msk [vmem:[%s6574_s4 + $0x70] sm:$0xff] %vm4065_vm3, %v3951_v38  ;;  %v3952_v16 = vadd.f32 %v5541_v56, %v6565_v51  ;;  %5518 = vmatmul.mubr.msk.bf16.gmra.mrb[120].mxu0 %vm791_vm2, %v5999_v55 }
 0x189   : > { %5391 = vmatprep.mubr.msk.bf16.mxu1 %vm791_vm2, %v6000_v63  ;;  %4078 = vst.msk [vmem:[%s6574_s4 + $0x60] sm:$0xff] %vm4065_vm3, %v3949_v61  ;;  %v3950_v18 = vadd.f32 %v5542_v15, %v6565_v51  ;;  %5521 = vmatprep.mubr.msk.bf16.mxu0 %vm791_vm2, %v6001_v5 }
 0x18a   : > { %4081 = vst.msk [vmem:[%s6574_s4 + $0x78] sm:$0xff] %vm4065_vm3, %v3952_v16 }
 0x18b   : > { %4079 = vst.msk [vmem:[%s6574_s4 + $0x68] sm:$0xff] %vm4065_vm3, %v3950_v18  ;;  %v5415_v21 = vpop.f32.mrb[16].mxu0 }
 0x18c   : > { %v5543_v49 = vadd.f32 %v5415_v21, %v6369_v23  ;;  %v3355_v17 = vpop.f32.mrb[17].mxu0 }
 0x18d   : > { %v5544_v44 = vadd.f32 %v3355_v17, %v6371_v24  ;;  %v5416_v22 = vpop.f32.mrb[18].mxu0 }
 0x18e   : > { %v3955_v28 = vadd.f32 %v5543_v49, %v6565_v51  ;;  %v5545_v19 = vadd.f32 %v5416_v22, %v6374_v26  ;;  %v3358_v7 = vpop.f32.mrb[19].mxu0 }
 0x18f   : > { %v3953_v8 = vadd.f32 %v5544_v44, %v6565_v51  ;;  %v5546_v10 = vadd.f32 %v3358_v7, %v6378_v29 }
 0x190   : > { %5392 = vmatmul.mubr.msk.bf16.gmra.mrb[124].mxu1 %vm791_vm2, %v6002_v12  ;;  %4084 = vst.msk [vmem:[%s6574_s4 + $0x90] sm:$0xff] %vm4065_vm3, %v3955_v28  ;;  %v3956_v23 = vadd.f32 %v5545_v19, %v6565_v51  ;;  %5522 = vmatmul.mubr.msk.bf16.gmra.mrb[124].mxu0 %vm791_vm2, %v6003_v54 }
 0x191   : > { %4082 = vst.msk [vmem:[%s6574_s4 + $0x80] sm:$0xff] %vm4065_vm3, %v3953_v8  ;;  %v3954_v24 = vadd.f32 %v5546_v10, %v6565_v51 }
 0x192   : > { %4085 = vst.msk [vmem:[%s6574_s4 + $0x98] sm:$0xff] %vm4065_vm3, %v3956_v23 }
 0x193   : > { %4083 = vst.msk [vmem:[%s6574_s4 + $0x88] sm:$0xff] %vm4065_vm3, %v3954_v24  ;;  %v5419_v26 = vpop.f32.mrb[20].mxu0 }
 0x194   : > { %v5547_v29 = vadd.f32 %v5419_v26, %v6385_v31  ;;  %v3371_v13 = vpop.f32.mrb[21].mxu0 }
 0x195   : > { %v5548_v33 = vadd.f32 %v3371_v13, %v6387_v32  ;;  %v5420_v3 = vpop.f32.mrb[22].mxu0 }
 0x196   : > { %v3959_v35 = vadd.f32 %v5547_v29, %v6565_v51  ;;  %v5549_v55 = vadd.f32 %v5420_v3, %v6390_v34  ;;  %v3374_v63 = vpop.f32.mrb[23].mxu0 }
 0x197   : > { %v3957_v0 = vadd.f32 %v5548_v33, %v6565_v51  ;;  %v5550_v2 = vadd.f32 %v3374_v63, %v6394_v37 }
 0x198   : > { %4088 = vst.msk [vmem:[%s6574_s4 + $0xb0] sm:$0xff] %vm4065_vm3, %v3959_v35  ;;  %v3960_v5 = vadd.f32 %v5549_v55, %v6565_v51 }
 0x199   : > { %4086 = vst.msk [vmem:[%s6574_s4 + $0xa0] sm:$0xff] %vm4065_vm3, %v3957_v0  ;;  %v3958_v31 = vadd.f32 %v5550_v2, %v6565_v51 }
 0x19a   : > { %4089 = vst.msk [vmem:[%s6574_s4 + $0xb8] sm:$0xff] %vm4065_vm3, %v3960_v5 }
 0x19b   : > { %4087 = vst.msk [vmem:[%s6574_s4 + $0xa8] sm:$0xff] %vm4065_vm3, %v3958_v31  ;;  %v5423_v32 = vpop.f32.mrb[24].mxu0 }
 0x19c   : > { %v5551_v34 = vadd.f32 %v5423_v32, %v6401_v39  ;;  %v3387_v37 = vpop.f32.mrb[25].mxu0 }
 0x19d   : > { %v5552_v38 = vadd.f32 %v3387_v37, %v6403_v40  ;;  %v5424_v56 = vpop.f32.mrb[26].mxu0 }
 0x19e   : > { %v3963_v58 = vadd.f32 %v5551_v34, %v6565_v51  ;;  %v5553_v61 = vadd.f32 %v5424_v56, %v6406_v42  ;;  %v3390_v15 = vpop.f32.mrb[27].mxu0 }
 0x19f   : > { %v3961_v16 = vadd.f32 %v5552_v38, %v6565_v51  ;;  %v5554_v18 = vadd.f32 %v3390_v15, %v6410_v45 }
 0x1a0   : > { %4092 = vst.msk [vmem:[%s6574_s4 + $0xd0] sm:$0xff] %vm4065_vm3, %v3963_v58  ;;  %v3964_v21 = vadd.f32 %v5553_v61, %v6565_v51 }
 0x1a1   : > { %4090 = vst.msk [vmem:[%s6574_s4 + $0xc0] sm:$0xff] %vm4065_vm3, %v3961_v16  ;;  %v3962_v39 = vadd.f32 %v5554_v18, %v6565_v51 }
 0x1a2   : > { %4093 = vst.msk [vmem:[%s6574_s4 + $0xd8] sm:$0xff] %vm4065_vm3, %v3964_v21 }
 0x1a3   : > { %4091 = vst.msk [vmem:[%s6574_s4 + $0xc8] sm:$0xff] %vm4065_vm3, %v3962_v39  ;;  %v5427_v40 = vpop.f32.mrb[28].mxu0 }
 0x1a4   : > { %v5555_v42 = vadd.f32 %v5427_v40, %v6417_v47  ;;  %v3403_v45 = vpop.f32.mrb[29].mxu0 }
 0x1a5   : > { %v5556_v12 = vadd.f32 %v3403_v45, %v6419_v48  ;;  %v5428_v49 = vpop.f32.mrb[30].mxu0 }
 0x1a6   : > { %v3967_v17 = vadd.f32 %v5555_v42, %v6565_v51  ;;  %v5557_v54 = vadd.f32 %v5428_v49, %v6422_v50  ;;  %v3406_v44 = vpop.f32.mrb[31].mxu0 }
 0x1a7   : > { %v3965_v22 = vadd.f32 %v5556_v12, %v6565_v51  ;;  %v5558_v28 = vadd.f32 %v3406_v44, %v6426_v53 }
 0x1a8   : > { %4096 = vst.msk [vmem:[%s6574_s4 + $0xf0] sm:$0xff] %vm4065_vm3, %v3967_v17  ;;  %v3968_v19 = vadd.f32 %v5557_v54, %v6565_v51 }
 0x1a9   : > { %4094 = vst.msk [vmem:[%s6574_s4 + $0xe0] sm:$0xff] %vm4065_vm3, %v3965_v22  ;;  %v3966_v47 = vadd.f32 %v5558_v28, %v6565_v51  ;;  %v7087_v28 = vld [vmem:[#allocation2_spill] sm:$0xff] }
 0x1aa   : > { %4097 = vst.msk [vmem:[%s6574_s4 + $0xf8] sm:$0xff] %vm4065_vm3, %v3968_v19 }
 0x1ab   : > { %4095 = vst.msk [vmem:[%s6574_s4 + $0xe8] sm:$0xff] %vm4065_vm3, %v3966_v47  ;;  %v5431_v48 = vpop.f32.mrb[32].mxu0 }
 0x1ac   : > { %v5559_v50 = vadd.f32 %v5431_v48, %v6433_v57  ;;  %v3419_v53 = vpop.f32.mrb[33].mxu0 }
 0x1ad   : > { %v5560_v7 = vadd.f32 %v3419_v53, %v6435_v59  ;;  %v5432_v8 = vpop.f32.mrb[34].mxu0  ;;  %v7089_v53 = vld [vmem:[#allocation4_spill] sm:$0xff] }
 0x1ae   : > { %v3971_v10 = vadd.f32 %v5559_v50, %v6565_v51  ;;  %v5561_v23 = vadd.f32 %v5432_v8, %v6438_v62  ;;  %v3422_v24 = vpop.f32.mrb[35].mxu0 }
 0x1af   : > { %v3969_v26 = vadd.f32 %v5560_v7, %v6565_v51  ;;  %v5562_v29 = vadd.f32 %v3422_v24, %v6442_v4 }
 0x1b0   : > { %4100 = vst.msk [vmem:[%s6574_s4 + $0x110] sm:$0xff] %vm4065_vm3, %v3971_v10  ;;  %v3972_v13 = vadd.f32 %v5561_v23, %v6565_v51  ;;  %v7090_v23 = vld [vmem:[#allocation5_spill] sm:$0xff] }
 0x1b1   : > { %4098 = vst.msk [vmem:[%s6574_s4 + $0x100] sm:$0xff] %vm4065_vm3, %v3969_v26  ;;  %v3970_v57 = vadd.f32 %v5562_v29, %v6565_v51 }
 0x1b2   : > { %4101 = vst.msk [vmem:[%s6574_s4 + $0x118] sm:$0xff] %vm4065_vm3, %v3972_v13  ;;  %v7091_v13 = vld [vmem:[#allocation6_spill] sm:$0xff] }
 0x1b3   : > { %4099 = vst.msk [vmem:[%s6574_s4 + $0x108] sm:$0xff] %vm4065_vm3, %v3970_v57  ;;  %v5435_v59 = vpop.f32.mrb[36].mxu0 }
 0x1b4   : > { %v5563_v62 = vadd.f32 %v5435_v59, %v6449_v9  ;;  %v3435_v4 = vpop.f32.mrb[37].mxu0 }
 0x1b5   : > { %v5564_v33 = vadd.f32 %v3435_v4, %v6451_v11  ;;  %v5436_v3 = vpop.f32.mrb[38].mxu0 }
 0x1b6   : > { %v3975_v35 = vadd.f32 %v5563_v62, %v6565_v51  ;;  %v5565_v55 = vadd.f32 %v5436_v3, %v6454_v14  ;;  %v3438_v63 = vpop.f32.mrb[39].mxu0 }
 0x1b7   : > { %v3973_v0 = vadd.f32 %v5564_v33, %v6565_v51  ;;  %v5566_v2 = vadd.f32 %v3438_v63, %v6458_v20  ;;  %v7092_v33 = vld [vmem:[#allocation7_spill] sm:$0xff] }
 0x1b8   : > { %4104 = vst.msk [vmem:[%s6574_s4 + $0x130] sm:$0xff] %vm4065_vm3, %v3975_v35  ;;  %v3976_v5 = vadd.f32 %v5565_v55, %v6565_v51  ;;  %v7093_v55 = vld [vmem:[#allocation8_spill] sm:$0xff] }
 0x1b9   : > { %4102 = vst.msk [vmem:[%s6574_s4 + $0x120] sm:$0xff] %vm4065_vm3, %v3973_v0  ;;  %v3974_v9 = vadd.f32 %v5566_v2, %v6565_v51 }
 0x1ba   : > { %4105 = vst.msk [vmem:[%s6574_s4 + $0x138] sm:$0xff] %vm4065_vm3, %v3976_v5  ;;  %v7094_v5 = vld [vmem:[#allocation9_spill] sm:$0xff] }
 0x1bb   : > { %4103 = vst.msk [vmem:[%s6574_s4 + $0x128] sm:$0xff] %vm4065_vm3, %v3974_v9  ;;  %v5439_v11 = vpop.f32.mrb[40].mxu0 }
 0x1bc   : > { %v5567_v14 = vadd.f32 %v5439_v11, %v6465_v25  ;;  %v3451_v20 = vpop.f32.mrb[41].mxu0 }
 0x1bd   : > { %v5568_v31 = vadd.f32 %v3451_v20, %v6467_v27  ;;  %v5440_v32 = vpop.f32.mrb[42].mxu0  ;;  %v7095_v20 = vld [vmem:[#allocation10_spill] sm:$0xff] }
 0x1be   : > { %v3979_v34 = vadd.f32 %v5567_v14, %v6565_v51  ;;  %v5569_v37 = vadd.f32 %v5440_v32, %v6470_v30  ;;  %v3454_v38 = vpop.f32.mrb[43].mxu0 }
 0x1bf   : > { %v3977_v56 = vadd.f32 %v5568_v31, %v6565_v51  ;;  %v5570_v58 = vadd.f32 %v3454_v38, %v6474_v36  ;;  %v7096_v38 = vld [vmem:[#allocation11_spill] sm:$0xff] }
 0x1c0   : > { %4108 = vst.msk [vmem:[%s6574_s4 + $0x150] sm:$0xff] %vm4065_vm3, %v3979_v34  ;;  %v3980_v61 = vadd.f32 %v5569_v37, %v6565_v51 }
 0x1c1   : > { %4106 = vst.msk [vmem:[%s6574_s4 + $0x140] sm:$0xff] %vm4065_vm3, %v3977_v56  ;;  %v3978_v25 = vadd.f32 %v5570_v58, %v6565_v51 }
 0x1c2   : > { %4109 = vst.msk [vmem:[%s6574_s4 + $0x158] sm:$0xff] %vm4065_vm3, %v3980_v61  ;;  %v7097_v61 = vld [vmem:[#allocation12_spill] sm:$0xff] }
 0x1c3   : > { %4107 = vst.msk [vmem:[%s6574_s4 + $0x148] sm:$0xff] %vm4065_vm3, %v3978_v25  ;;  %v5443_v27 = vpop.f32.mrb[44].mxu0 }
 0x1c4   : > { %v5571_v30 = vadd.f32 %v5443_v27, %v6481_v41  ;;  %v3467_v36 = vpop.f32.mrb[45].mxu0 }
 0x1c5   : > { %v5572_v15 = vadd.f32 %v3467_v36, %v6483_v43  ;;  %v5444_v16 = vpop.f32.mrb[46].mxu0  ;;  %v7098_v36 = vld [vmem:[#allocation13_spill] sm:$0xff] }
 0x1c6   : > { %v3983_v18 = vadd.f32 %v5571_v30, %v6565_v51  ;;  %v5573_v21 = vadd.f32 %v5444_v16, %v6486_v46  ;;  %v3470_v39 = vpop.f32.mrb[47].mxu0 }
 0x1c7   : > { %v3981_v40 = vadd.f32 %v5572_v15, %v6565_v51  ;;  %v5574_v42 = vadd.f32 %v3470_v39, %v6490_v52 }
 0x1c8   : > { %4112 = vst.msk [vmem:[%s6574_s4 + $0x170] sm:$0xff] %vm4065_vm3, %v3983_v18  ;;  %v3984_v45 = vadd.f32 %v5573_v21, %v6565_v51  ;;  %v7099_v21 = vld [vmem:[#allocation14_spill] sm:$0xff] }
 0x1c9   : > { %4110 = vst.msk [vmem:[%s6574_s4 + $0x160] sm:$0xff] %vm4065_vm3, %v3981_v40  ;;  %v3982_v41 = vadd.f32 %v5574_v42, %v6565_v51 }
 0x1ca   : > { %4113 = vst.msk [vmem:[%s6574_s4 + $0x178] sm:$0xff] %vm4065_vm3, %v3984_v45 }
 0x1cb   : > { %4111 = vst.msk [vmem:[%s6574_s4 + $0x168] sm:$0xff] %vm4065_vm3, %v3982_v41  ;;  %v5447_v43 = vpop.f32.mrb[48].mxu0 }
 0x1cc   : > { %v5575_v46 = vadd.f32 %v5447_v43, %v6497_v60  ;;  %v3483_v52 = vpop.f32.mrb[49].mxu0 }
 0x1cd   : > { %v5576_v12 = vadd.f32 %v3483_v52, %v6499_v1  ;;  %v5448_v49 = vpop.f32.mrb[50].mxu0 }
 0x1ce   : > { %v3987_v17 = vadd.f32 %v5575_v46, %v6565_v51  ;;  %v5577_v54 = vadd.f32 %v5448_v49, %v6502_v6  ;;  %v3486_v44 = vpop.f32.mrb[51].mxu0  ;;  %v7088_v6 = vld [vmem:[#allocation3_spill] sm:$0xff] }
 0x1cf   : > { %v3985_v22 = vadd.f32 %v5576_v12, %v6565_v51  ;;  %v5578_v19 = vadd.f32 %v3486_v44, %v7087_v28 }
 0x1d0   : > { %4116 = vst.msk [vmem:[%s6574_s4 + $0x190] sm:$0xff] %vm4065_vm3, %v3987_v17  ;;  %v3988_v47 = vadd.f32 %v5577_v54, %v6565_v51 }
 0x1d1   : > { %4114 = vst.msk [vmem:[%s6574_s4 + $0x180] sm:$0xff] %vm4065_vm3, %v3985_v22  ;;  %v3986_v60 = vadd.f32 %v5578_v19, %v6565_v51 }
 0x1d2   : > { %4117 = vst.msk [vmem:[%s6574_s4 + $0x198] sm:$0xff] %vm4065_vm3, %v3988_v47 }
 0x1d3   : > { %4115 = vst.msk [vmem:[%s6574_s4 + $0x188] sm:$0xff] %vm4065_vm3, %v3986_v60  ;;  %v5451_v1 = vpop.f32.mrb[52].mxu0 }
 0x1d4   : > { %v5579_v48 = vadd.f32 %v5451_v1, %v7088_v6  ;;  %v3499_v50 = vpop.f32.mrb[53].mxu0 }
 0x1d5   : > { %v5580_v7 = vadd.f32 %v3499_v50, %v7089_v53  ;;  %v5452_v8 = vpop.f32.mrb[54].mxu0 }
 0x1d6   : > { %v3991_v10 = vadd.f32 %v5579_v48, %v6565_v51  ;;  %v5581_v24 = vadd.f32 %v5452_v8, %v7090_v23  ;;  %v3502_v26 = vpop.f32.mrb[55].mxu0 }
 0x1d7   : > { %v3989_v29 = vadd.f32 %v5580_v7, %v6565_v51  ;;  %v5582_v57 = vadd.f32 %v3502_v26, %v7091_v13 }
 0x1d8   : > { %4120 = vst.msk [vmem:[%s6574_s4 + $0x1b0] sm:$0xff] %vm4065_vm3, %v3991_v10  ;;  %v3992_v59 = vadd.f32 %v5581_v24, %v6565_v51 }
 0x1d9   : > { %4118 = vst.msk [vmem:[%s6574_s4 + $0x1a0] sm:$0xff] %vm4065_vm3, %v3989_v29  ;;  %v3990_v62 = vadd.f32 %v5582_v57, %v6565_v51 }
 0x1da   : > { %4121 = vst.msk [vmem:[%s6574_s4 + $0x1b8] sm:$0xff] %vm4065_vm3, %v3992_v59 }
 0x1db   : > { %4119 = vst.msk [vmem:[%s6574_s4 + $0x1a8] sm:$0xff] %vm4065_vm3, %v3990_v62  ;;  %v5455_v4 = vpop.f32.mrb[56].mxu0 }
 0x1dc   : > { %v5583_v3 = vadd.f32 %v5455_v4, %v7092_v33  ;;  %v3515_v35 = vpop.f32.mrb[57].mxu0 }
 0x1dd   : > { %v5584_v63 = vadd.f32 %v3515_v35, %v7093_v55  ;;  %v5456_v0 = vpop.f32.mrb[58].mxu0 }
 0x1de   : > { %v3995_v2 = vadd.f32 %v5583_v3, %v6565_v51  ;;  %v5585_v9 = vadd.f32 %v5456_v0, %v7094_v5  ;;  %v3518_v11 = vpop.f32.mrb[59].mxu0 }
 0x1df   : > { %v3993_v14 = vadd.f32 %v5584_v63, %v6565_v51  ;;  %v5586_v31 = vadd.f32 %v3518_v11, %v7095_v20 }
 0x1e0   : > { %4124 = vst.msk [vmem:[%s6574_s4 + $0x1d0] sm:$0xff] %vm4065_vm3, %v3995_v2  ;;  %v3996_v32 = vadd.f32 %v5585_v9, %v6565_v51 }
 0x1e1   : > { %4122 = vst.msk [vmem:[%s6574_s4 + $0x1c0] sm:$0xff] %vm4065_vm3, %v3993_v14  ;;  %v3994_v34 = vadd.f32 %v5586_v31, %v6565_v51 }
 0x1e2   : > { %4125 = vst.msk [vmem:[%s6574_s4 + $0x1d8] sm:$0xff] %vm4065_vm3, %v3996_v32 }
 0x1e3   : > { %4123 = vst.msk [vmem:[%s6574_s4 + $0x1c8] sm:$0xff] %vm4065_vm3, %v3994_v34  ;;  %v5459_v37 = vpop.f32.mrb[60].mxu0 }
 0x1e4   : > { %v5587_v56 = vadd.f32 %v5459_v37, %v7096_v38  ;;  %v3531_v58 = vpop.f32.mrb[61].mxu0 }
 0x1e5   : > { %v5588_v25 = vadd.f32 %v3531_v58, %v7097_v61  ;;  %v5460_v27 = vpop.f32.mrb[62].mxu0 }
 0x1e6   : > { %v3999_v30 = vadd.f32 %v5587_v56, %v6565_v51  ;;  %v5589_v15 = vadd.f32 %v5460_v27, %v7098_v36  ;;  %v3534_v16 = vpop.f32.mrb[63].mxu0 }
 0x1e7   : > { %v3997_v18 = vadd.f32 %v5588_v25, %v6565_v51  ;;  %v5590_v39 = vadd.f32 %v3534_v16, %v7099_v21 }
 0x1e8   : > { %4128 = vst.msk [vmem:[%s6574_s4 + $0x1f0] sm:$0xff] %vm4065_vm3, %v3999_v30  ;;  %v4000_v40 = vadd.f32 %v5589_v15, %v6565_v51 }
 0x1e9   : > { %4126 = vst.msk [vmem:[%s6574_s4 + $0x1e0] sm:$0xff] %vm4065_vm3, %v3997_v18  ;;  %v3998_v42 = vadd.f32 %v5590_v39, %v6565_v51 }
 0x1ea   : > { %4129 = vst.msk [vmem:[%s6574_s4 + $0x1f8] sm:$0xff] %vm4065_vm3, %v4000_v40 }
 0x1eb   : > { %v5333_v45 = vpop.f32.mrb[64].mxu1  ;;  %4127 = vst.msk [vmem:[%s6574_s4 + $0x1e8] sm:$0xff] %vm4065_vm3, %v3998_v42  ;;  %v5463_v41 = vpop.f32.mrb[64].mxu0 }
 0x1ec   : > { %v2346_v43 = vpop.f32.mrb[65].mxu1  ;;  %v5591_v46 = vadd.f32 %v5463_v41, %v5333_v45  ;;  %v3547_v52 = vpop.f32.mrb[65].mxu0 }
 0x1ed   : > { %v5334_v12 = vpop.f32.mrb[66].mxu1  ;;  %v5592_v49 = vadd.f32 %v3547_v52, %v2346_v43  ;;  %v5464_v17 = vpop.f32.mrb[66].mxu0 }
 0x1ee   : > { %v2349_v54 = vpop.f32.mrb[67].mxu1  ;;  %v4003_v44 = vadd.f32 %v5591_v46, %v6565_v51  ;;  %v5593_v22 = vadd.f32 %v5464_v17, %v5334_v12  ;;  %v3550_v28 = vpop.f32.mrb[67].mxu0 }
 0x1ef   : > { %v4001_v19 = vadd.f32 %v5592_v49, %v6565_v51  ;;  %v5594_v47 = vadd.f32 %v3550_v28, %v2349_v54 }
 0x1f0   : > { %4132 = vst.msk [vmem:[%s6574_s4 + $0x210] sm:$0xff] %vm4065_vm3, %v4003_v44  ;;  %v4004_v60 = vadd.f32 %v5593_v22, %v6565_v51 }
 0x1f1   : > { %4130 = vst.msk [vmem:[%s6574_s4 + $0x200] sm:$0xff] %vm4065_vm3, %v4001_v19  ;;  %v4002_v1 = vadd.f32 %v5594_v47, %v6565_v51 }
 0x1f2   : > { %4133 = vst.msk [vmem:[%s6574_s4 + $0x218] sm:$0xff] %vm4065_vm3, %v4004_v60 }
 0x1f3   : > { %v5337_v6 = vpop.f32.mrb[68].mxu1  ;;  %4131 = vst.msk [vmem:[%s6574_s4 + $0x208] sm:$0xff] %vm4065_vm3, %v4002_v1  ;;  %v5467_v48 = vpop.f32.mrb[68].mxu0 }
 0x1f4   : > { %v2362_v50 = vpop.f32.mrb[69].mxu1  ;;  %v5595_v53 = vadd.f32 %v5467_v48, %v5337_v6  ;;  %v3563_v7 = vpop.f32.mrb[69].mxu0 }
 0x1f5   : > { %v5338_v8 = vpop.f32.mrb[70].mxu1  ;;  %v5596_v10 = vadd.f32 %v3563_v7, %v2362_v50  ;;  %v5468_v23 = vpop.f32.mrb[70].mxu0 }
 0x1f6   : > { %v2365_v24 = vpop.f32.mrb[71].mxu1  ;;  %v4007_v26 = vadd.f32 %v5595_v53, %v6565_v51  ;;  %v5597_v29 = vadd.f32 %v5468_v23, %v5338_v8  ;;  %v3566_v13 = vpop.f32.mrb[71].mxu0 }
 0x1f7   : > { %v4005_v57 = vadd.f32 %v5596_v10, %v6565_v51  ;;  %v5598_v59 = vadd.f32 %v3566_v13, %v2365_v24 }
 0x1f8   : > { %4136 = vst.msk [vmem:[%s6574_s4 + $0x230] sm:$0xff] %vm4065_vm3, %v4007_v26  ;;  %v4008_v62 = vadd.f32 %v5597_v29, %v6565_v51 }
 0x1f9   : > { %4134 = vst.msk [vmem:[%s6574_s4 + $0x220] sm:$0xff] %vm4065_vm3, %v4005_v57  ;;  %v4006_v4 = vadd.f32 %v5598_v59, %v6565_v51 }
 0x1fa   : > { %4137 = vst.msk [vmem:[%s6574_s4 + $0x238] sm:$0xff] %vm4065_vm3, %v4008_v62 }
 0x1fb   : > { %v5341_v33 = vpop.f32.mrb[72].mxu1  ;;  %4135 = vst.msk [vmem:[%s6574_s4 + $0x228] sm:$0xff] %vm4065_vm3, %v4006_v4  ;;  %v5471_v3 = vpop.f32.mrb[72].mxu0 }
 0x1fc   : > { %v2378_v35 = vpop.f32.mrb[73].mxu1  ;;  %v5599_v55 = vadd.f32 %v5471_v3, %v5341_v33  ;;  %v3579_v63 = vpop.f32.mrb[73].mxu0 }
 0x1fd   : > { %v5342_v0 = vpop.f32.mrb[74].mxu1  ;;  %v5600_v2 = vadd.f32 %v3579_v63, %v2378_v35  ;;  %v5472_v5 = vpop.f32.mrb[74].mxu0 }
 0x1fe   : > { %v2381_v9 = vpop.f32.mrb[75].mxu1  ;;  %v4011_v11 = vadd.f32 %v5599_v55, %v6565_v51  ;;  %v5601_v14 = vadd.f32 %v5472_v5, %v5342_v0  ;;  %v3582_v20 = vpop.f32.mrb[75].mxu0 }
 0x1ff   : > { %v4009_v31 = vadd.f32 %v5600_v2, %v6565_v51  ;;  %v5602_v32 = vadd.f32 %v3582_v20, %v2381_v9 }
 0x200   : > { %4140 = vst.msk [vmem:[%s6574_s4 + $0x250] sm:$0xff] %vm4065_vm3, %v4011_v11  ;;  %v4012_v34 = vadd.f32 %v5601_v14, %v6565_v51 }
 0x201   : > { %4138 = vst.msk [vmem:[%s6574_s4 + $0x240] sm:$0xff] %vm4065_vm3, %v4009_v31  ;;  %v4010_v37 = vadd.f32 %v5602_v32, %v6565_v51 }
 0x202   : > { %4141 = vst.msk [vmem:[%s6574_s4 + $0x258] sm:$0xff] %vm4065_vm3, %v4012_v34 }
 0x203   : > { %v5345_v38 = vpop.f32.mrb[76].mxu1  ;;  %4139 = vst.msk [vmem:[%s6574_s4 + $0x248] sm:$0xff] %vm4065_vm3, %v4010_v37  ;;  %v5475_v56 = vpop.f32.mrb[76].mxu0 }
 0x204   : > { %v2394_v58 = vpop.f32.mrb[77].mxu1  ;;  %v5603_v61 = vadd.f32 %v5475_v56, %v5345_v38  ;;  %v3595_v25 = vpop.f32.mrb[77].mxu0 }
 0x205   : > { %v5346_v27 = vpop.f32.mrb[78].mxu1  ;;  %v5604_v30 = vadd.f32 %v3595_v25, %v2394_v58  ;;  %v5476_v36 = vpop.f32.mrb[78].mxu0 }
 0x206   : > { %v2397_v15 = vpop.f32.mrb[79].mxu1  ;;  %v4015_v16 = vadd.f32 %v5603_v61, %v6565_v51  ;;  %v5605_v18 = vadd.f32 %v5476_v36, %v5346_v27  ;;  %v3598_v21 = vpop.f32.mrb[79].mxu0 }
 0x207   : > { %v4013_v39 = vadd.f32 %v5604_v30, %v6565_v51  ;;  %v5606_v40 = vadd.f32 %v3598_v21, %v2397_v15 }
 0x208   : > { %4144 = vst.msk [vmem:[%s6574_s4 + $0x270] sm:$0xff] %vm4065_vm3, %v4015_v16  ;;  %v4016_v42 = vadd.f32 %v5605_v18, %v6565_v51 }
 0x209   : > { %4142 = vst.msk [vmem:[%s6574_s4 + $0x260] sm:$0xff] %vm4065_vm3, %v4013_v39  ;;  %v4014_v45 = vadd.f32 %v5606_v40, %v6565_v51 }
 0x20a   : > { %4145 = vst.msk [vmem:[%s6574_s4 + $0x278] sm:$0xff] %vm4065_vm3, %v4016_v42 }
 0x20b   : > { %v5349_v41 = vpop.f32.mrb[80].mxu1  ;;  %4143 = vst.msk [vmem:[%s6574_s4 + $0x268] sm:$0xff] %vm4065_vm3, %v4014_v45  ;;  %v5479_v43 = vpop.f32.mrb[80].mxu0 }
 0x20c   : > { %v2410_v46 = vpop.f32.mrb[81].mxu1  ;;  %v5607_v52 = vadd.f32 %v5479_v43, %v5349_v41  ;;  %v3611_v12 = vpop.f32.mrb[81].mxu0 }
 0x20d   : > { %v5350_v49 = vpop.f32.mrb[82].mxu1  ;;  %v5608_v17 = vadd.f32 %v3611_v12, %v2410_v46  ;;  %v5480_v54 = vpop.f32.mrb[82].mxu0 }
 0x20e   : > { %v2413_v44 = vpop.f32.mrb[83].mxu1  ;;  %v4019_v22 = vadd.f32 %v5607_v52, %v6565_v51  ;;  %v5609_v28 = vadd.f32 %v5480_v54, %v5350_v49  ;;  %v3614_v19 = vpop.f32.mrb[83].mxu0 }
 0x20f   : > { %v4017_v47 = vadd.f32 %v5608_v17, %v6565_v51  ;;  %v5610_v60 = vadd.f32 %v3614_v19, %v2413_v44 }
 0x210   : > { %4148 = vst.msk [vmem:[%s6574_s4 + $0x290] sm:$0xff] %vm4065_vm3, %v4019_v22  ;;  %v4020_v1 = vadd.f32 %v5609_v28, %v6565_v51 }
 0x211   : > { %4146 = vst.msk [vmem:[%s6574_s4 + $0x280] sm:$0xff] %vm4065_vm3, %v4017_v47  ;;  %v4018_v6 = vadd.f32 %v5610_v60, %v6565_v51 }
 0x212   : > { %4149 = vst.msk [vmem:[%s6574_s4 + $0x298] sm:$0xff] %vm4065_vm3, %v4020_v1 }
 0x213   : > { %v5353_v48 = vpop.f32.mrb[84].mxu1  ;;  %4147 = vst.msk [vmem:[%s6574_s4 + $0x288] sm:$0xff] %vm4065_vm3, %v4018_v6  ;;  %v5483_v50 = vpop.f32.mrb[84].mxu0 }
 0x214   : > { %v2426_v53 = vpop.f32.mrb[85].mxu1  ;;  %v5611_v7 = vadd.f32 %v5483_v50, %v5353_v48  ;;  %v3627_v8 = vpop.f32.mrb[85].mxu0 }
 0x215   : > { %v5354_v10 = vpop.f32.mrb[86].mxu1  ;;  %v5612_v23 = vadd.f32 %v3627_v8, %v2426_v53  ;;  %v5484_v24 = vpop.f32.mrb[86].mxu0 }
 0x216   : > { %v2429_v26 = vpop.f32.mrb[87].mxu1  ;;  %v4023_v29 = vadd.f32 %v5611_v7, %v6565_v51  ;;  %v5613_v13 = vadd.f32 %v5484_v24, %v5354_v10  ;;  %v3630_v57 = vpop.f32.mrb[87].mxu0 }
 0x217   : > { %v4021_v59 = vadd.f32 %v5612_v23, %v6565_v51  ;;  %v5614_v62 = vadd.f32 %v3630_v57, %v2429_v26 }
 0x218   : > { %4152 = vst.msk [vmem:[%s6574_s4 + $0x2b0] sm:$0xff] %vm4065_vm3, %v4023_v29  ;;  %v4024_v4 = vadd.f32 %v5613_v13, %v6565_v51 }
 0x219   : > { %4150 = vst.msk [vmem:[%s6574_s4 + $0x2a0] sm:$0xff] %vm4065_vm3, %v4021_v59  ;;  %v4022_v33 = vadd.f32 %v5614_v62, %v6565_v51 }
 0x21a   : > { %4153 = vst.msk [vmem:[%s6574_s4 + $0x2b8] sm:$0xff] %vm4065_vm3, %v4024_v4 }
 0x21b   : > { %v5357_v3 = vpop.f32.mrb[88].mxu1  ;;  %4151 = vst.msk [vmem:[%s6574_s4 + $0x2a8] sm:$0xff] %vm4065_vm3, %v4022_v33  ;;  %v5487_v35 = vpop.f32.mrb[88].mxu0 }
 0x21c   : > { %v2442_v55 = vpop.f32.mrb[89].mxu1  ;;  %v5615_v63 = vadd.f32 %v5487_v35, %v5357_v3  ;;  %v3643_v0 = vpop.f32.mrb[89].mxu0 }
 0x21d   : > { %v5358_v2 = vpop.f32.mrb[90].mxu1  ;;  %v5616_v5 = vadd.f32 %v3643_v0, %v2442_v55  ;;  %v5488_v9 = vpop.f32.mrb[90].mxu0 }
 0x21e   : > { %v2445_v11 = vpop.f32.mrb[91].mxu1  ;;  %v4027_v14 = vadd.f32 %v5615_v63, %v6565_v51  ;;  %v5617_v20 = vadd.f32 %v5488_v9, %v5358_v2  ;;  %v3646_v31 = vpop.f32.mrb[91].mxu0 }
 0x21f   : > { %v4025_v32 = vadd.f32 %v5616_v5, %v6565_v51  ;;  %v5618_v34 = vadd.f32 %v3646_v31, %v2445_v11 }
 0x220   : > { %4156 = vst.msk [vmem:[%s6574_s4 + $0x2d0] sm:$0xff] %vm4065_vm3, %v4027_v14  ;;  %v4028_v37 = vadd.f32 %v5617_v20, %v6565_v51 }
 0x221   : > { %4154 = vst.msk [vmem:[%s6574_s4 + $0x2c0] sm:$0xff] %vm4065_vm3, %v4025_v32  ;;  %v4026_v38 = vadd.f32 %v5618_v34, %v6565_v51 }
 0x222   : > { %4157 = vst.msk [vmem:[%s6574_s4 + $0x2d8] sm:$0xff] %vm4065_vm3, %v4028_v37 }
 0x223   : > { %v5361_v56 = vpop.f32.mrb[92].mxu1  ;;  %4155 = vst.msk [vmem:[%s6574_s4 + $0x2c8] sm:$0xff] %vm4065_vm3, %v4026_v38  ;;  %v5491_v58 = vpop.f32.mrb[92].mxu0 }
 0x224   : > { %v2458_v61 = vpop.f32.mrb[93].mxu1  ;;  %v5619_v25 = vadd.f32 %v5491_v58, %v5361_v56  ;;  %v3659_v27 = vpop.f32.mrb[93].mxu0 }
 0x225   : > { %v5362_v30 = vpop.f32.mrb[94].mxu1  ;;  %v5620_v36 = vadd.f32 %v3659_v27, %v2458_v61  ;;  %v5492_v15 = vpop.f32.mrb[94].mxu0 }
 0x226   : > { %v2461_v16 = vpop.f32.mrb[95].mxu1  ;;  %v4031_v18 = vadd.f32 %v5619_v25, %v6565_v51  ;;  %v5621_v21 = vadd.f32 %v5492_v15, %v5362_v30  ;;  %v3662_v39 = vpop.f32.mrb[95].mxu0 }
 0x227   : > { %v4029_v40 = vadd.f32 %v5620_v36, %v6565_v51  ;;  %v5622_v42 = vadd.f32 %v3662_v39, %v2461_v16 }
 0x228   : > { %4160 = vst.msk [vmem:[%s6574_s4 + $0x2f0] sm:$0xff] %vm4065_vm3, %v4031_v18  ;;  %v4032_v45 = vadd.f32 %v5621_v21, %v6565_v51 }
 0x229   : > { %4158 = vst.msk [vmem:[%s6574_s4 + $0x2e0] sm:$0xff] %vm4065_vm3, %v4029_v40  ;;  %v4030_v41 = vadd.f32 %v5622_v42, %v6565_v51 }
 0x22a   : > { %4161 = vst.msk [vmem:[%s6574_s4 + $0x2f8] sm:$0xff] %vm4065_vm3, %v4032_v45 }
 0x22b   : > { %v5365_v43 = vpop.f32.mrb[96].mxu1  ;;  %4159 = vst.msk [vmem:[%s6574_s4 + $0x2e8] sm:$0xff] %vm4065_vm3, %v4030_v41  ;;  %v5495_v46 = vpop.f32.mrb[96].mxu0 }
 0x22c   : > { %v2474_v52 = vpop.f32.mrb[97].mxu1  ;;  %v5623_v12 = vadd.f32 %v5495_v46, %v5365_v43  ;;  %v3675_v49 = vpop.f32.mrb[97].mxu0 }
 0x22d   : > { %v5366_v17 = vpop.f32.mrb[98].mxu1  ;;  %v5624_v54 = vadd.f32 %v3675_v49, %v2474_v52  ;;  %v5496_v44 = vpop.f32.mrb[98].mxu0 }
 0x22e   : > { %v2477_v22 = vpop.f32.mrb[99].mxu1  ;;  %v4035_v28 = vadd.f32 %v5623_v12, %v6565_v51  ;;  %v5625_v19 = vadd.f32 %v5496_v44, %v5366_v17  ;;  %v3678_v47 = vpop.f32.mrb[99].mxu0 }
 0x22f   : > { %v4033_v60 = vadd.f32 %v5624_v54, %v6565_v51  ;;  %v5626_v1 = vadd.f32 %v3678_v47, %v2477_v22 }
 0x230   : > { %4164 = vst.msk [vmem:[%s6574_s4 + $0x310] sm:$0xff] %vm4065_vm3, %v4035_v28  ;;  %v4036_v6 = vadd.f32 %v5625_v19, %v6565_v51 }
 0x231   : > { %4162 = vst.msk [vmem:[%s6574_s4 + $0x300] sm:$0xff] %vm4065_vm3, %v4033_v60  ;;  %v4034_v48 = vadd.f32 %v5626_v1, %v6565_v51 }
 0x232   : > { %4165 = vst.msk [vmem:[%s6574_s4 + $0x318] sm:$0xff] %vm4065_vm3, %v4036_v6 }
 0x233   : > { %v5369_v50 = vpop.f32.mrb[100].mxu1  ;;  %4163 = vst.msk [vmem:[%s6574_s4 + $0x308] sm:$0xff] %vm4065_vm3, %v4034_v48  ;;  %v5499_v53 = vpop.f32.mrb[100].mxu0 }
 0x234   : > { %v2490_v7 = vpop.f32.mrb[101].mxu1  ;;  %v5627_v8 = vadd.f32 %v5499_v53, %v5369_v50  ;;  %v3691_v10 = vpop.f32.mrb[101].mxu0 }
 0x235   : > { %v5370_v23 = vpop.f32.mrb[102].mxu1  ;;  %v5628_v24 = vadd.f32 %v3691_v10, %v2490_v7  ;;  %v5500_v26 = vpop.f32.mrb[102].mxu0 }
 0x236   : > { %v2493_v29 = vpop.f32.mrb[103].mxu1  ;;  %v4039_v13 = vadd.f32 %v5627_v8, %v6565_v51  ;;  %v5629_v57 = vadd.f32 %v5500_v26, %v5370_v23  ;;  %v3694_v59 = vpop.f32.mrb[103].mxu0 }
 0x237   : > { %v4037_v62 = vadd.f32 %v5628_v24, %v6565_v51  ;;  %v5630_v4 = vadd.f32 %v3694_v59, %v2493_v29 }
 0x238   : > { %4168 = vst.msk [vmem:[%s6574_s4 + $0x330] sm:$0xff] %vm4065_vm3, %v4039_v13  ;;  %v4040_v33 = vadd.f32 %v5629_v57, %v6565_v51 }
 0x239   : > { %4166 = vst.msk [vmem:[%s6574_s4 + $0x320] sm:$0xff] %vm4065_vm3, %v4037_v62  ;;  %v4038_v3 = vadd.f32 %v5630_v4, %v6565_v51 }
 0x23a   : > { %4169 = vst.msk [vmem:[%s6574_s4 + $0x338] sm:$0xff] %vm4065_vm3, %v4040_v33 }
 0x23b   : > { %v5373_v35 = vpop.f32.mrb[104].mxu1  ;;  %4167 = vst.msk [vmem:[%s6574_s4 + $0x328] sm:$0xff] %vm4065_vm3, %v4038_v3  ;;  %v5503_v55 = vpop.f32.mrb[104].mxu0 }
 0x23c   : > { %v2506_v63 = vpop.f32.mrb[105].mxu1  ;;  %v5631_v0 = vadd.f32 %v5503_v55, %v5373_v35  ;;  %v3707_v2 = vpop.f32.mrb[105].mxu0 }
 0x23d   : > { %v5374_v5 = vpop.f32.mrb[106].mxu1  ;;  %v5632_v9 = vadd.f32 %v3707_v2, %v2506_v63  ;;  %v5504_v11 = vpop.f32.mrb[106].mxu0 }
 0x23e   : > { %v2509_v14 = vpop.f32.mrb[107].mxu1  ;;  %v4043_v20 = vadd.f32 %v5631_v0, %v6565_v51  ;;  %v5633_v31 = vadd.f32 %v5504_v11, %v5374_v5  ;;  %v3710_v32 = vpop.f32.mrb[107].mxu0 }
 0x23f   : > { %v4041_v34 = vadd.f32 %v5632_v9, %v6565_v51  ;;  %v5634_v37 = vadd.f32 %v3710_v32, %v2509_v14 }
 0x240   : > { %4172 = vst.msk [vmem:[%s6574_s4 + $0x350] sm:$0xff] %vm4065_vm3, %v4043_v20  ;;  %v4044_v38 = vadd.f32 %v5633_v31, %v6565_v51 }
 0x241   : > { %4170 = vst.msk [vmem:[%s6574_s4 + $0x340] sm:$0xff] %vm4065_vm3, %v4041_v34  ;;  %v4042_v56 = vadd.f32 %v5634_v37, %v6565_v51  ;;  %v6999_v51 = vld [vmem:[%s7072_s2] ss:$0 sm:$0xff] }
 0x242   : > { %4173 = vst.msk [vmem:[%s6574_s4 + $0x358] sm:$0xff] %vm4065_vm3, %v4044_v38 }
 0x243   : > { %v5377_v58 = vpop.f32.mrb[108].mxu1  ;;  %4171 = vst.msk [vmem:[%s6574_s4 + $0x348] sm:$0xff] %vm4065_vm3, %v4042_v56  ;;  %v5507_v61 = vpop.f32.mrb[108].mxu0 }
 0x244   : > { %v2522_v25 = vpop.f32.mrb[109].mxu1  ;;  %v5635_v27 = vadd.f32 %v5507_v61, %v5377_v58  ;;  %v3723_v30 = vpop.f32.mrb[109].mxu0 }
 0x245   : > { %v5378_v36 = vpop.f32.mrb[110].mxu1  ;;  %v5636_v15 = vadd.f32 %v3723_v30, %v2522_v25  ;;  %v5508_v16 = vpop.f32.mrb[110].mxu0 }
 0x246   : > { %v2525_v18 = vpop.f32.mrb[111].mxu1  ;;  %v4047_v21 = vadd.f32 %v6999_v51, %v5635_v27  ;;  %v5637_v39 = vadd.f32 %v5508_v16, %v5378_v36  ;;  %v3726_v40 = vpop.f32.mrb[111].mxu0 }
 0x247   : > { %v4045_v42 = vadd.f32 %v6999_v51, %v5636_v15  ;;  %v5638_v45 = vadd.f32 %v3726_v40, %v2525_v18 }
 0x248   : > { %4176 = vst.msk [vmem:[%s6574_s4 + $0x370] sm:$0xff] %vm4065_vm3, %v4047_v21  ;;  %v4048_v41 = vadd.f32 %v6999_v51, %v5637_v39 }
 0x249   : > { %4174 = vst.msk [vmem:[%s6574_s4 + $0x360] sm:$0xff] %vm4065_vm3, %v4045_v42  ;;  %v4046_v43 = vadd.f32 %v6999_v51, %v5638_v45 }
 0x24a   : > { %4177 = vst.msk [vmem:[%s6574_s4 + $0x378] sm:$0xff] %vm4065_vm3, %v4048_v41 }
 0x24b   : > { %v5381_v46 = vpop.f32.mrb[112].mxu1  ;;  %4175 = vst.msk [vmem:[%s6574_s4 + $0x368] sm:$0xff] %vm4065_vm3, %v4046_v43  ;;  %v5511_v52 = vpop.f32.mrb[112].mxu0 }
 0x24c   : > { %v2538_v12 = vpop.f32.mrb[113].mxu1  ;;  %v5639_v49 = vadd.f32 %v5511_v52, %v5381_v46  ;;  %v3739_v17 = vpop.f32.mrb[113].mxu0 }
 0x24d   : > { %v5382_v54 = vpop.f32.mrb[114].mxu1  ;;  %v5640_v44 = vadd.f32 %v3739_v17, %v2538_v12  ;;  %v5512_v22 = vpop.f32.mrb[114].mxu0 }
 0x24e   : > { %v2541_v28 = vpop.f32.mrb[115].mxu1  ;;  %v4051_v19 = vadd.f32 %v6999_v51, %v5639_v49  ;;  %v5641_v47 = vadd.f32 %v5512_v22, %v5382_v54  ;;  %v3742_v60 = vpop.f32.mrb[115].mxu0 }
 0x24f   : > { %v4049_v1 = vadd.f32 %v6999_v51, %v5640_v44  ;;  %v5642_v6 = vadd.f32 %v3742_v60, %v2541_v28 }
 0x250   : > { %4180 = vst.msk [vmem:[%s6574_s4 + $0x390] sm:$0xff] %vm4065_vm3, %v4051_v19  ;;  %v4052_v48 = vadd.f32 %v6999_v51, %v5641_v47 }
 0x251   : > { %4178 = vst.msk [vmem:[%s6574_s4 + $0x380] sm:$0xff] %vm4065_vm3, %v4049_v1  ;;  %v4050_v50 = vadd.f32 %v6999_v51, %v5642_v6 }
 0x252   : > { %4181 = vst.msk [vmem:[%s6574_s4 + $0x398] sm:$0xff] %vm4065_vm3, %v4052_v48 }
 0x253   : > { %v5385_v53 = vpop.f32.mrb[116].mxu1  ;;  %4179 = vst.msk [vmem:[%s6574_s4 + $0x388] sm:$0xff] %vm4065_vm3, %v4050_v50  ;;  %v5515_v7 = vpop.f32.mrb[116].mxu0 }
 0x254   : > { %v2554_v8 = vpop.f32.mrb[117].mxu1  ;;  %v5643_v10 = vadd.f32 %v5515_v7, %v5385_v53  ;;  %v3755_v23 = vpop.f32.mrb[117].mxu0 }
 0x255   : > { %v5386_v24 = vpop.f32.mrb[118].mxu1  ;;  %v5644_v26 = vadd.f32 %v3755_v23, %v2554_v8  ;;  %v5516_v29 = vpop.f32.mrb[118].mxu0 }
 0x256   : > { %v2557_v13 = vpop.f32.mrb[119].mxu1  ;;  %v4055_v57 = vadd.f32 %v6999_v51, %v5643_v10  ;;  %v5645_v59 = vadd.f32 %v5516_v29, %v5386_v24  ;;  %v3758_v62 = vpop.f32.mrb[119].mxu0 }
 0x257   : > { %v4053_v4 = vadd.f32 %v6999_v51, %v5644_v26  ;;  %v5646_v33 = vadd.f32 %v3758_v62, %v2557_v13 }
 0x258   : > { %4184 = vst.msk [vmem:[%s6574_s4 + $0x3b0] sm:$0xff] %vm4065_vm3, %v4055_v57  ;;  %v4056_v3 = vadd.f32 %v6999_v51, %v5645_v59 }
 0x259   : > { %4182 = vst.msk [vmem:[%s6574_s4 + $0x3a0] sm:$0xff] %vm4065_vm3, %v4053_v4  ;;  %v4054_v35 = vadd.f32 %v6999_v51, %v5646_v33 }
 0x25a   : > { %4185 = vst.msk [vmem:[%s6574_s4 + $0x3b8] sm:$0xff] %vm4065_vm3, %v4056_v3 }
 0x25b   : > { %v5389_v55 = vpop.f32.mrb[120].mxu1  ;;  %4183 = vst.msk [vmem:[%s6574_s4 + $0x3a8] sm:$0xff] %vm4065_vm3, %v4054_v35  ;;  %v5519_v63 = vpop.f32.mrb[120].mxu0 }
 0x25c   : > { %v2570_v0 = vpop.f32.mrb[121].mxu1  ;;  %v5647_v2 = vadd.f32 %v5519_v63, %v5389_v55  ;;  %v3771_v5 = vpop.f32.mrb[121].mxu0 }
 0x25d   : > { %v5390_v9 = vpop.f32.mrb[122].mxu1  ;;  %v5648_v11 = vadd.f32 %v3771_v5, %v2570_v0  ;;  %v5520_v14 = vpop.f32.mrb[122].mxu0 }
 0x25e   : > { %v2573_v20 = vpop.f32.mrb[123].mxu1  ;;  %v4059_v31 = vadd.f32 %v6999_v51, %v5647_v2  ;;  %v5649_v32 = vadd.f32 %v5520_v14, %v5390_v9  ;;  %v3774_v34 = vpop.f32.mrb[123].mxu0 }
 0x25f   : > { %v4057_v37 = vadd.f32 %v6999_v51, %v5648_v11  ;;  %v5650_v38 = vadd.f32 %v3774_v34, %v2573_v20 }
 0x260   : > { %4188 = vst.msk [vmem:[%s6574_s4 + $0x3d0] sm:$0xff] %vm4065_vm3, %v4059_v31  ;;  %v4060_v56 = vadd.f32 %v6999_v51, %v5649_v32 }
 0x261   : > { %4186 = vst.msk [vmem:[%s6574_s4 + $0x3c0] sm:$0xff] %vm4065_vm3, %v4057_v37  ;;  %v4058_v58 = vadd.f32 %v6999_v51, %v5650_v38 }
 0x262   : > { %4189 = vst.msk [vmem:[%s6574_s4 + $0x3d8] sm:$0xff] %vm4065_vm3, %v4060_v56 }
 0x263   : > { %v5393_v61 = vpop.f32.mrb[124].mxu1  ;;  %4187 = vst.msk [vmem:[%s6574_s4 + $0x3c8] sm:$0xff] %vm4065_vm3, %v4058_v58  ;;  %v5523_v25 = vpop.f32.mrb[124].mxu0 }
 0x264   : > { %v2586_v27 = vpop.f32.mrb[125].mxu1  ;;  %v5651_v30 = vadd.f32 %v5523_v25, %v5393_v61  ;;  %v3787_v36 = vpop.f32.mrb[125].mxu0 }
 0x265   : > { %v5394_v15 = vpop.f32.mrb[126].mxu1  ;;  %v5652_v16 = vadd.f32 %v3787_v36, %v2586_v27  ;;  %v5524_v18 = vpop.f32.mrb[126].mxu0 }
 0x266   : > { %v2589_v21 = vpop.f32.mrb[127].mxu1  ;;  %v4063_v39 = vadd.f32 %v6999_v51, %v5651_v30  ;;  %v5653_v40 = vadd.f32 %v5524_v18, %v5394_v15  ;;  %v3790_v42 = vpop.f32.mrb[127].mxu0 }
 0x267   : > { %v4061_v45 = vadd.f32 %v6999_v51, %v5652_v16  ;;  %v5654_v41 = vadd.f32 %v3790_v42, %v2589_v21 }
 0x268   : > { %4192 = vst.msk [vmem:[%s6574_s4 + $0x3f0] sm:$0xff] %vm4065_vm3, %v4063_v39  ;;  %v4064_v43 = vadd.f32 %v6999_v51, %v5653_v40 }
 0x269   : > { %4190 = vst.msk [vmem:[%s6574_s4 + $0x3e0] sm:$0xff] %vm4065_vm3, %v4061_v45  ;;  %v4062_v46 = vadd.f32 %v6999_v51, %v5654_v41 }
 0x26a   : > { %4193 = vst.msk [vmem:[%s6574_s4 + $0x3f8] sm:$0xff] %vm4065_vm3, %v4064_v43 }
 0x26b   : > { %4191 = vst.msk [vmem:[%s6574_s4 + $0x3e8] sm:$0xff] %vm4065_vm3, %v4062_v46 }
 0x26c PF: > { %s13_s14 = sadd.s32 1, %s6027_s14   ;;  %s7100_s12 = smov %s6023_s13 }
 0x26d   : > { %p10_p5 = scmp.ge.s32.totalorder %s13_s14, 5   ;;  %s7101_s13 = smov %s7103_s15 }
 0x26f   :  { %12 = sbr.rel (!%p10_p5) target bundleno = 2 (0x2), region = 67 }

</bundles_post_ra>
